<compile_context>
chip_gen: v7x
topology: tpu7x:2x2x1
jax: 0.10.0
libtpu: 0.0.40
codegen_flags: <defaults>
</compile_context>

<pallas_src>
import functools
import math

import jax
import jax.numpy as jnp
from jax import lax
from jax.experimental import pallas as pl
from jax.experimental.pallas import tpu as pltpu

BN_EPS = 1e-5
LEAKY_SLOPE = 0.01  # nn.LeakyReLU default negative_slope


def _round_up(x, m):
    return ((x + m - 1) // m) * m


def _choose_wp(h, w):
    """Padded width so H*Wp is a multiple of 128 (when not too wasteful)."""
    base = w + 2
    step = 128 // math.gcd(h, 128)
    wp = _round_up(base, step)
    return wp if wp <= 2 * base else base


def _conv_stats_kernel(x_ref, w_ref, colid_ref, conv_ref, sum_ref, sq_ref,
                       slab_ref, *, H, W, Wp):
    """3x3 conv as ONE MXU contraction + BN partial stats, one image per step.

    x_ref    : [1, Cin, L]      bf16 reflect-padded, row-flattened image
    w_ref    : [Cout, 9*Cin]    bf16 tap-major weights
    colid_ref: [1, H*Wp]        int32 lane -> column index (lane % Wp)
    conv_ref : [1, Cout, H*Wp]  bf16 conv output (padded-width layout)
    sum_ref  : [1, Cout, 1]     f32 per-image per-channel sum (valid cols)
    sq_ref   : [1, Cout, 1]     f32 per-image per-channel sum of squares
    slab_ref : [9*Cin, H*Wp]    f32 VMEM scratch, stacked shifted slices
    """
    HWp = H * Wp
    cin = x_ref.shape[1]
    # Stack the 9 shifted lane-slices once (tap-major) into the VMEM slab.
    for kh in range(3):
        for kw in range(3):
            t = kh * 3 + kw
            start = kh * Wp + kw
            slab_ref[t * cin:(t + 1) * cin, :] = (
                x_ref[0, :, start:start + HWp].astype(jnp.float32))
    # One deep contraction on the MXU: [Cout, 9*Cin] @ [9*Cin, H*Wp].
    acc = jnp.dot(w_ref[...], slab_ref[...].astype(jnp.bfloat16),
                  preferred_element_type=jnp.float32)
    conv_ref[0] = acc.astype(conv_ref.dtype)

    # BN partial statistics over the valid (non padded-width) columns only.
    valid = colid_ref[...] < W                      # [1, H*Wp]
    a = jnp.where(valid, acc, 0.0)
    sum_ref[0] = jnp.sum(a, axis=1, keepdims=True)
    sq_ref[0] = jnp.sum(a * a, axis=1, keepdims=True)


def _shift_p(y, k):
    """out[..., i] = y[..., i-k] (zeros at the left edge)."""
    z = jnp.zeros((y.shape[0], k), y.dtype)
    return jnp.concatenate([z, y[:, :y.shape[1] - k]], axis=1)


def _shift_m(y, k):
    """out[..., i] = y[..., i+k] (zeros at the right edge)."""
    z = jnp.zeros((y.shape[0], k), y.dtype)
    return jnp.concatenate([y[:, k:], z], axis=1)


def _bn_pad_kernel(conv_ref, scale_ref, shift_ref, colid_ref, out_ref,
                   *, H, W, Wp, L):
    """BN-apply + LeakyReLU, then emit the reflect-padded row-flattened
    activation (the next conv layer's input) directly -- no XLA crop/pad.

    conv_ref   : [1, Cout, H*Wp] bf16
    scale/shift: [Cout, 1]       f32 folded BN scale/shift
    colid_ref  : [1, H*Wp]       int32 lane -> column index
    out_ref    : [1, Cout, L]    bf16 padded-flattened activation
    """
    HWp = H * Wp
    cout = conv_ref.shape[1]
    y = conv_ref[0].astype(jnp.float32) * scale_ref[...] + shift_ref[...]
    y = jnp.maximum(y, LEAKY_SLOPE * y)             # [Cout, H*Wp]

    # Width reflection inside each Wp-segment via lane shifts + selects:
    #   wp == 0   -> act[.., 1]
    #   1..W      -> act[.., wp-1]
    #   wp == W+1 -> act[.., W-2]
    col = colid_ref[...]
    pw = jnp.where(col == 0, _shift_m(y, 1),
                   jnp.where(col == W + 1, _shift_p(y, 3), _shift_p(y, 1)))
    pw = pw.astype(out_ref.dtype)

    # Row reflection: interior rows are a contiguous shift by Wp; the top /
    # bottom padded rows repeat (width-padded) activation rows 1 and H-2.
    out_ref[0, :, Wp:Wp + HWp] = pw
    out_ref[0, :, 0:Wp] = pw[:, Wp:2 * Wp]
    out_ref[0, :, (H + 1) * Wp:(H + 2) * Wp] = pw[:, (H - 2) * Wp:(H - 1) * Wp]
    if L > (H + 2) * Wp:  # guard lanes (only read by masked/garbage taps)
        out_ref[0, :, (H + 2) * Wp:L] = jnp.zeros(
            (cout, L - (H + 2) * Wp), out_ref.dtype)


def _bn_crop_kernel(conv_ref, scale_ref, shift_ref, o_ref, *, H, W, Wp):
    """BN-apply + LeakyReLU with the width-crop folded in (final layer).

    conv_ref: [1, Cout, H*Wp] bf16 ;  o_ref: [1, Cout, H, W] f32
    """
    y = conv_ref[0].astype(jnp.float32) * scale_ref[...] + shift_ref[...]
    y = jnp.maximum(y, LEAKY_SLOPE * y)
    for h in range(H):  # static unroll: pick the W valid columns of each row
        o_ref[0, :, h, :] = y[:, h * Wp:h * Wp + W]


def _conv_bn_lrelu_layer(xflat, conv_w, gamma, beta, colid,
                         *, n, h, w, wp, L, last):
    """One Conv(3x3, reflect, no bias) -> BN(batch stats) -> LeakyReLU stage.

    xflat: [N, Cin, L] bf16 reflect-padded row-flattened input.  Returns the
    next layer's padded-flattened bf16 input, or (if `last`) the cropped
    [N, Cout, H, W] f32 activation.
    """
    cin = xflat.shape[1]
    cout = conv_w.shape[0]
    hwp = h * wp

    # [Cout, Cin, 3, 3] -> [Cout, 9*Cin] (tap-major, matches the slab order).
    w9 = conv_w.transpose(0, 2, 3, 1).reshape(cout, 9 * cin).astype(jnp.bfloat16)

    # Pass 1: conv (single MXU contraction) + per-image BN partials.
    conv, sums, sqs = pl.pallas_call(
        functools.partial(_conv_stats_kernel, H=h, W=w, Wp=wp),
        out_shape=(
            jax.ShapeDtypeStruct((n, cout, hwp), jnp.bfloat16),
            jax.ShapeDtypeStruct((n, cout, 1), jnp.float32),
            jax.ShapeDtypeStruct((n, cout, 1), jnp.float32),
        ),
        grid=(n,),
        in_specs=[
            pl.BlockSpec((1, cin, L), lambda i: (i, 0, 0)),
            pl.BlockSpec((cout, 9 * cin), lambda i: (0, 0)),
            pl.BlockSpec((1, hwp), lambda i: (0, 0)),
        ],
        out_specs=(
            pl.BlockSpec((1, cout, hwp), lambda i: (i, 0, 0)),
            pl.BlockSpec((1, cout, 1), lambda i: (i, 0, 0)),
            pl.BlockSpec((1, cout, 1), lambda i: (i, 0, 0)),
        ),
        scratch_shapes=[pltpu.VMEM((9 * cin, hwp), jnp.float32)],
        compiler_params=pltpu.CompilerParams(
            dimension_semantics=("parallel",)),
    )(xflat, w9, colid)

    # Global batch statistics (tiny reduction), folded into scale/shift.
    count = n * h * w
    mean = jnp.sum(sums[:, :, 0], axis=0) / count                 # [Cout]
    var = jnp.sum(sqs[:, :, 0], axis=0) / count - mean * mean     # biased var
    scale = (gamma.astype(jnp.float32) * lax.rsqrt(var + BN_EPS)).reshape(cout, 1)
    shift = beta.astype(jnp.float32).reshape(cout, 1) - mean.reshape(cout, 1) * scale

    if last:
        # Pass 2 (final): BN + LeakyReLU with the width-crop folded in.
        return pl.pallas_call(
            functools.partial(_bn_crop_kernel, H=h, W=w, Wp=wp),
            out_shape=jax.ShapeDtypeStruct((n, cout, h, w), jnp.float32),
            grid=(n,),
            in_specs=[
                pl.BlockSpec((1, cout, hwp), lambda i: (i, 0, 0)),
                pl.BlockSpec((cout, 1), lambda i: (0, 0)),
                pl.BlockSpec((cout, 1), lambda i: (0, 0)),
            ],
            out_specs=pl.BlockSpec((1, cout, h, w), lambda i: (i, 0, 0, 0)),
            compiler_params=pltpu.CompilerParams(
                dimension_semantics=("parallel",)),
        )(conv, scale, shift)

    # Pass 2: BN + LeakyReLU, emitting the next layer's padded input directly.
    return pl.pallas_call(
        functools.partial(_bn_pad_kernel, H=h, W=w, Wp=wp, L=L),
        out_shape=jax.ShapeDtypeStruct((n, cout, L), jnp.bfloat16),
        grid=(n,),
        in_specs=[
            pl.BlockSpec((1, cout, hwp), lambda i: (i, 0, 0)),
            pl.BlockSpec((cout, 1), lambda i: (0, 0)),
            pl.BlockSpec((cout, 1), lambda i: (0, 0)),
            pl.BlockSpec((1, hwp), lambda i: (0, 0)),
        ],
        out_specs=pl.BlockSpec((1, cout, L), lambda i: (i, 0, 0)),
        compiler_params=pltpu.CompilerParams(
            dimension_semantics=("parallel",)),
    )(conv, scale, shift, colid)


def conv_block_forward(x, w1, g1, b1, w2, g2, b2):
    # TODO(synk): nn.Dropout2d(0.3) is stochastic; implemented as identity
    # (eval-mode behavior) so the forward is deterministic.
    n, cin, h, w = x.shape
    wp = _choose_wp(h, w)
    hp = h + 2
    L = _round_up(hp * wp + 2, 128)  # +2 guard lanes for the (kh=2,kw=2) tap

    # Layer-1 glue only: reflect-pad + row-flatten the (small, Cin-channel)
    # network input once.  Between the layers the padded-flattened layout is
    # produced directly by the pass-2 kernel -- no XLA pad/crop round trip.
    # TODO(synk): this initial pad could also move in-kernel (row tiles+halo).
    xp = jnp.pad(x, ((0, 0), (0, 0), (1, 1), (1, 1)), mode="reflect")
    xp = jnp.pad(xp, ((0, 0), (0, 0), (0, 0), (0, wp - (w + 2))))
    xflat = jnp.pad(xp.reshape(n, cin, hp * wp),
                    ((0, 0), (0, 0), (0, L - hp * wp))).astype(jnp.bfloat16)

    colid = (jnp.arange(h * wp, dtype=jnp.int32) % wp).reshape(1, h * wp)

    y = _conv_bn_lrelu_layer(xflat, w1, g1, b1, colid,
                             n=n, h=h, w=w, wp=wp, L=L, last=False)
    return _conv_bn_lrelu_layer(y, w2, g2, b2, colid,
                                n=n, h=h, w=w, wp=wp, L=L, last=True)


def _reference(x, w1, g1, b1, w2, g2, b2):
    def layer(xx, cw, g, b):
        xp = jnp.pad(xx, ((0, 0), (0, 0), (1, 1), (1, 1)), mode="reflect")
        conv = lax.conv_general_dilated(
            xp, cw, window_strides=(1, 1), padding="VALID",
            dimension_numbers=("NCHW", "OIHW", "NCHW"))
        mean = conv.mean(axis=(0, 2, 3), keepdims=True)
        var = conv.var(axis=(0, 2, 3), keepdims=True)
        y = (conv - mean) * lax.rsqrt(var + BN_EPS)
        y = y * g.reshape(1, -1, 1, 1) + b.reshape(1, -1, 1, 1)
        return jnp.maximum(y, LEAKY_SLOPE * y)

    return layer(layer(x, w1, g1, b1), w2, g2, b2)


if __name__ == "__main__":
    key = jax.random.PRNGKey(0)
    k = jax.random.split(key, 7)

    N, Cin, Cout, H, W = 2, 4, 8, 16, 16
    x = jax.random.normal(k[0], (N, Cin, H, W), dtype=jnp.float32)

    # Deterministic parameter init (Conv2d kaiming-ish scale; BN affine ~1/~0).
    w1 = jax.random.normal(k[1], (Cout, Cin, 3, 3), jnp.float32) / jnp.sqrt(Cin * 9)
    w2 = jax.random.normal(k[2], (Cout, Cout, 3, 3), jnp.float32) / jnp.sqrt(Cout * 9)
    g1 = 1.0 + 0.1 * jax.random.normal(k[3], (Cout,), jnp.float32)
    b1 = 0.1 * jax.random.normal(k[4], (Cout,), jnp.float32)
    g2 = 1.0 + 0.1 * jax.random.normal(k[5], (Cout,), jnp.float32)
    b2 = 0.1 * jax.random.normal(k[6], (Cout,), jnp.float32)

    fwd = jax.jit(conv_block_forward)
    out = jax.block_until_ready(fwd(x, w1, g1, b1, w2, g2, b2))

    ref = _reference(x, w1, g1, b1, w2, g2, b2)
    assert out.shape == (N, Cout, H, W), out.shape
    max_err = float(jnp.max(jnp.abs(out - ref)))
    # bf16 storage of the conv / activation intermediates (per perf review)
    # -> agreement at the ~1e-2 level vs. the f32 XLA reference.
    assert jnp.allclose(out, ref, atol=3e-2, rtol=3e-2), max_err
    print("KERNEL_OK")
</pallas_src>

<mosaic_0001>
module attributes {stable_mosaic.version = 11 : i64} {
  func.func @_conv_stats_kernel(%arg0: i32, %arg1: memref<1x4x512xbf16, #tpu.memory_space<vmem>>, %arg2: memref<8x36xbf16, #tpu.memory_space<vmem>>, %arg3: memref<1x384xi32, #tpu.memory_space<vmem>>, %arg4: memref<1x8x384xbf16, #tpu.memory_space<vmem>>, %arg5: memref<1x8x1xf32, #tpu.memory_space<vmem>>, %arg6: memref<1x8x1xf32, #tpu.memory_space<vmem>>, %arg7: memref<36x384xf32, #tpu.memory_space<vmem>>) attributes {dimension_semantics = [#tpu.dimension_semantics<parallel>], iteration_bounds = array<i64: 2>, scalar_prefetch = 0 : i64, scratch_operands = 1 : i64, tpu.core_type = #tpu.core_type<tc>, window_params = [{transform_indices = @transform_0, window_bounds = array<i64: 1, 4, 512>}, {pipeline_mode = #tpu.pipeline_mode<synchronous>, transform_indices = @transform_1, window_bounds = array<i64: 8, 36>}, {pipeline_mode = #tpu.pipeline_mode<synchronous>, transform_indices = @transform_2, window_bounds = array<i64: 1, 384>}, {transform_indices = @transform_3, window_bounds = array<i64: 1, 8, 384>}, {transform_indices = @transform_4, window_bounds = array<i64: 1, 8, 1>}, {transform_indices = @transform_5, window_bounds = array<i64: 1, 8, 1>}]} {
    %c0 = arith.constant 0 : index
    %c0_0 = arith.constant 0 : index
    %c0_1 = arith.constant 0 : index
    %0 = vector.load %arg1[%c0, %c0_0, %c0_1] : memref<1x4x512xbf16, #tpu.memory_space<vmem>>, vector<1x4x384xbf16>
    %1 = vector.shape_cast %0 : vector<1x4x384xbf16> to vector<4x384xbf16>
    %2 = arith.extf %1 : vector<4x384xbf16> to vector<4x384xf32>
    %c0_2 = arith.constant 0 : index
    %c0_3 = arith.constant 0 : index
    %3 = vector.load %arg7[%c0_2, %c0_3] : memref<36x384xf32, #tpu.memory_space<vmem>>, vector<4x384xf32>
    tpu.vector_store %arg7[%c0_2, %c0_3], %2 {strides = array<i32>} : memref<36x384xf32, #tpu.memory_space<vmem>>, vector<4x384xf32>,
    %c0_4 = arith.constant 0 : index
    %c0_5 = arith.constant 0 : index
    %c1 = arith.constant 1 : index
    %4 = vector.load %arg1[%c0_4, %c0_5, %c1] : memref<1x4x512xbf16, #tpu.memory_space<vmem>>, vector<1x4x384xbf16>
    %5 = vector.shape_cast %4 : vector<1x4x384xbf16> to vector<4x384xbf16>
    %6 = arith.extf %5 : vector<4x384xbf16> to vector<4x384xf32>
    %c4 = arith.constant 4 : index
    %c0_6 = arith.constant 0 : index
    %7 = vector.load %arg7[%c4, %c0_6] : memref<36x384xf32, #tpu.memory_space<vmem>>, vector<4x384xf32>
    tpu.vector_store %arg7[%c4, %c0_6], %6 {strides = array<i32>} : memref<36x384xf32, #tpu.memory_space<vmem>>, vector<4x384xf32>,
    %c0_7 = arith.constant 0 : index
    %c0_8 = arith.constant 0 : index
    %c2 = arith.constant 2 : index
    %8 = vector.load %arg1[%c0_7, %c0_8, %c2] : memref<1x4x512xbf16, #tpu.memory_space<vmem>>, vector<1x4x384xbf16>
    %9 = vector.shape_cast %8 : vector<1x4x384xbf16> to vector<4x384xbf16>
    %10 = arith.extf %9 : vector<4x384xbf16> to vector<4x384xf32>
    %c8 = arith.constant 8 : index
    %c0_9 = arith.constant 0 : index
    %11 = vector.load %arg7[%c8, %c0_9] : memref<36x384xf32, #tpu.memory_space<vmem>>, vector<4x384xf32>
    tpu.vector_store %arg7[%c8, %c0_9], %10 {strides = array<i32>} : memref<36x384xf32, #tpu.memory_space<vmem>>, vector<4x384xf32>,
    %c0_10 = arith.constant 0 : index
    %c0_11 = arith.constant 0 : index
    %c24 = arith.constant 24 : index
    %12 = vector.load %arg1[%c0_10, %c0_11, %c24] : memref<1x4x512xbf16, #tpu.memory_space<vmem>>, vector<1x4x384xbf16>
    %13 = vector.shape_cast %12 : vector<1x4x384xbf16> to vector<4x384xbf16>
    %14 = arith.extf %13 : vector<4x384xbf16> to vector<4x384xf32>
    %c12 = arith.constant 12 : index
    %c0_12 = arith.constant 0 : index
    %15 = vector.load %arg7[%c12, %c0_12] : memref<36x384xf32, #tpu.memory_space<vmem>>, vector<4x384xf32>
    tpu.vector_store %arg7[%c12, %c0_12], %14 {strides = array<i32>} : memref<36x384xf32, #tpu.memory_space<vmem>>, vector<4x384xf32>,
    %c0_13 = arith.constant 0 : index
    %c0_14 = arith.constant 0 : index
    %c25 = arith.constant 25 : index
    %16 = vector.load %arg1[%c0_13, %c0_14, %c25] : memref<1x4x512xbf16, #tpu.memory_space<vmem>>, vector<1x4x384xbf16>
    %17 = vector.shape_cast %16 : vector<1x4x384xbf16> to vector<4x384xbf16>
    %18 = arith.extf %17 : vector<4x384xbf16> to vector<4x384xf32>
    %c16 = arith.constant 16 : index
    %c0_15 = arith.constant 0 : index
    %19 = vector.load %arg7[%c16, %c0_15] : memref<36x384xf32, #tpu.memory_space<vmem>>, vector<4x384xf32>
    tpu.vector_store %arg7[%c16, %c0_15], %18 {strides = array<i32>} : memref<36x384xf32, #tpu.memory_space<vmem>>, vector<4x384xf32>,
    %c0_16 = arith.constant 0 : index
    %c0_17 = arith.constant 0 : index
    %c26 = arith.constant 26 : index
    %20 = vector.load %arg1[%c0_16, %c0_17, %c26] : memref<1x4x512xbf16, #tpu.memory_space<vmem>>, vector<1x4x384xbf16>
    %21 = vector.shape_cast %20 : vector<1x4x384xbf16> to vector<4x384xbf16>
    %22 = arith.extf %21 : vector<4x384xbf16> to vector<4x384xf32>
    %c20 = arith.constant 20 : index
    %c0_18 = arith.constant 0 : index
    %23 = vector.load %arg7[%c20, %c0_18] : memref<36x384xf32, #tpu.memory_space<vmem>>, vector<4x384xf32>
    tpu.vector_store %arg7[%c20, %c0_18], %22 {strides = array<i32>} : memref<36x384xf32, #tpu.memory_space<vmem>>, vector<4x384xf32>,
    %c0_19 = arith.constant 0 : index
    %c0_20 = arith.constant 0 : index
    %c48 = arith.constant 48 : index
    %24 = vector.load %arg1[%c0_19, %c0_20, %c48] : memref<1x4x512xbf16, #tpu.memory_space<vmem>>, vector<1x4x384xbf16>
    %25 = vector.shape_cast %24 : vector<1x4x384xbf16> to vector<4x384xbf16>
    %26 = arith.extf %25 : vector<4x384xbf16> to vector<4x384xf32>
    %c24_21 = arith.constant 24 : index
    %c0_22 = arith.constant 0 : index
    %27 = vector.load %arg7[%c24_21, %c0_22] : memref<36x384xf32, #tpu.memory_space<vmem>>, vector<4x384xf32>
    tpu.vector_store %arg7[%c24_21, %c0_22], %26 {strides = array<i32>} : memref<36x384xf32, #tpu.memory_space<vmem>>, vector<4x384xf32>,
    %c0_23 = arith.constant 0 : index
    %c0_24 = arith.constant 0 : index
    %c49 = arith.constant 49 : index
    %28 = vector.load %arg1[%c0_23, %c0_24, %c49] : memref<1x4x512xbf16, #tpu.memory_space<vmem>>, vector<1x4x384xbf16>
    %29 = vector.shape_cast %28 : vector<1x4x384xbf16> to vector<4x384xbf16>
    %30 = arith.extf %29 : vector<4x384xbf16> to vector<4x384xf32>
    %c28 = arith.constant 28 : index
    %c0_25 = arith.constant 0 : index
    %31 = vector.load %arg7[%c28, %c0_25] : memref<36x384xf32, #tpu.memory_space<vmem>>, vector<4x384xf32>
    tpu.vector_store %arg7[%c28, %c0_25], %30 {strides = array<i32>} : memref<36x384xf32, #tpu.memory_space<vmem>>, vector<4x384xf32>,
    %c0_26 = arith.constant 0 : index
    %c0_27 = arith.constant 0 : index
    %c50 = arith.constant 50 : index
    %32 = vector.load %arg1[%c0_26, %c0_27, %c50] : memref<1x4x512xbf16, #tpu.memory_space<vmem>>, vector<1x4x384xbf16>
    %33 = vector.shape_cast %32 : vector<1x4x384xbf16> to vector<4x384xbf16>
    %34 = arith.extf %33 : vector<4x384xbf16> to vector<4x384xf32>
    %c32 = arith.constant 32 : index
    %c0_28 = arith.constant 0 : index
    %35 = vector.load %arg7[%c32, %c0_28] : memref<36x384xf32, #tpu.memory_space<vmem>>, vector<4x384xf32>
    tpu.vector_store %arg7[%c32, %c0_28], %34 {strides = array<i32>} : memref<36x384xf32, #tpu.memory_space<vmem>>, vector<4x384xf32>,
    %c0_29 = arith.constant 0 : index
    %c0_30 = arith.constant 0 : index
    %36 = vector.load %arg2[%c0_29, %c0_30] : memref<8x36xbf16, #tpu.memory_space<vmem>>, vector<8x36xbf16>
    %c0_31 = arith.constant 0 : index
    %c0_32 = arith.constant 0 : index
    %37 = vector.load %arg7[%c0_31, %c0_32] : memref<36x384xf32, #tpu.memory_space<vmem>>, vector<36x384xf32>
    %38 = arith.truncf %37 : vector<36x384xf32> to vector<36x384xbf16>
    %cst = arith.constant dense<0.000000e+00> : vector<8x384xf32>
    %39 = tpu.matmul %36, %38, %cst {dimension_numbers = #tpu.dot_dimension_numbers<[1], [0], [0], [1], [0, 0, 1, 1], [], []>} : vector<8x36xbf16>, vector<36x384xbf16>, vector<8x384xf32> -> vector<8x384xf32>
    %40 = arith.truncf %39 : vector<8x384xf32> to vector<8x384xbf16>
    %c0_33 = arith.constant 0 : index
    %c0_34 = arith.constant 0 : index
    %c0_35 = arith.constant 0 : index
    %41 = vector.load %arg4[%c0_33, %c0_34, %c0_35] : memref<1x8x384xbf16, #tpu.memory_space<vmem>>, vector<1x8x384xbf16>
    %42 = vector.shape_cast %41 : vector<1x8x384xbf16> to vector<8x384xbf16>
    %43 = vector.shape_cast %40 : vector<8x384xbf16> to vector<1x8x384xbf16>
    tpu.vector_store %arg4[%c0_33, %c0_34, %c0_35], %43 {strides = array<i32>} : memref<1x8x384xbf16, #tpu.memory_space<vmem>>, vector<1x8x384xbf16>,
    %c0_36 = arith.constant 0 : index
    %c0_37 = arith.constant 0 : index
    %44 = vector.load %arg3[%c0_36, %c0_37] : memref<1x384xi32, #tpu.memory_space<vmem>>, vector<1x384xi32>
    %c16_i32 = arith.constant 16 : i32
    %45 = vector.broadcast %c16_i32 : i32 to vector<1x384xi32>
    %46 = arith.cmpi slt, %44, %45 : vector<1x384xi32>
    %cst_38 = arith.constant 0.000000e+00 : f32
    %47 = vector.shape_cast %46 : vector<1x384xi1> to vector<1x384xi1>
    %48 = vector.broadcast %47 : vector<1x384xi1> to vector<8x384xi1>
    %49 = vector.broadcast %cst_38 : f32 to vector<8x384xf32>
    %50 = arith.select %48, %39, %49 : vector<8x384xi1>, vector<8x384xf32>
    %cst_39 = arith.constant dense<0.000000e+00> : vector<8xf32>
    %51 = vector.multi_reduction <add>, %50, %cst_39 [1] : vector<8x384xf32> to vector<8xf32>
    %52 = vector.shape_cast %51 : vector<8xf32> to vector<8x1xf32>
    %c0_40 = arith.constant 0 : index
    %c0_41 = arith.constant 0 : index
    %c0_42 = arith.constant 0 : index
    %53 = vector.load %arg5[%c0_40, %c0_41, %c0_42] : memref<1x8x1xf32, #tpu.memory_space<vmem>>, vector<1x8x1xf32>
    %54 = vector.shape_cast %53 : vector<1x8x1xf32> to vector<8x1xf32>
    %55 = vector.shape_cast %52 : vector<8x1xf32> to vector<1x8x1xf32>
    tpu.vector_store %arg5[%c0_40, %c0_41, %c0_42], %55 {strides = array<i32>} : memref<1x8x1xf32, #tpu.memory_space<vmem>>, vector<1x8x1xf32>,
    %56 = arith.mulf %50, %50 : vector<8x384xf32>
    %cst_43 = arith.constant dense<0.000000e+00> : vector<8xf32>
    %57 = vector.multi_reduction <add>, %56, %cst_43 [1] : vector<8x384xf32> to vector<8xf32>
    %58 = vector.shape_cast %57 : vector<8xf32> to vector<8x1xf32>
    %c0_44 = arith.constant 0 : index
    %c0_45 = arith.constant 0 : index
    %c0_46 = arith.constant 0 : index
    %59 = vector.load %arg6[%c0_44, %c0_45, %c0_46] : memref<1x8x1xf32, #tpu.memory_space<vmem>>, vector<1x8x1xf32>
    %60 = vector.shape_cast %59 : vector<1x8x1xf32> to vector<8x1xf32>
    %61 = vector.shape_cast %58 : vector<8x1xf32> to vector<1x8x1xf32>
    tpu.vector_store %arg6[%c0_44, %c0_45, %c0_46], %61 {strides = array<i32>} : memref<1x8x1xf32, #tpu.memory_space<vmem>>, vector<1x8x1xf32>,
    return
  }
  func.func @transform_0(%arg0: i32) -> (i32, i32, i32) {
    %c0_i32 = arith.constant 0 : i32
    %c0_i32_0 = arith.constant 0 : i32
    %c0_i32_1 = arith.constant 0 : i32
    return %arg0, %c0_i32, %c0_i32_0 : i32, i32, i32
  }
  func.func @transform_1(%arg0: i32) -> (i32, i32) {
    %c0_i32 = arith.constant 0 : i32
    %c0_i32_0 = arith.constant 0 : i32
    %c0_i32_1 = arith.constant 0 : i32
    return %c0_i32, %c0_i32_0 : i32, i32
  }
  func.func @transform_2(%arg0: i32) -> (i32, i32) {
    %c0_i32 = arith.constant 0 : i32
    %c0_i32_0 = arith.constant 0 : i32
    %c0_i32_1 = arith.constant 0 : i32
    return %c0_i32, %c0_i32_0 : i32, i32
  }
  func.func @transform_3(%arg0: i32) -> (i32, i32, i32) {
    %c0_i32 = arith.constant 0 : i32
    %c0_i32_0 = arith.constant 0 : i32
    %c0_i32_1 = arith.constant 0 : i32
    return %arg0, %c0_i32, %c0_i32_0 : i32, i32, i32
  }
  func.func @transform_4(%arg0: i32) -> (i32, i32, i32) {
    %c0_i32 = arith.constant 0 : i32
    %c0_i32_0 = arith.constant 0 : i32
    %c0_i32_1 = arith.constant 0 : i32
    return %arg0, %c0_i32, %c0_i32_0 : i32, i32, i32
  }
  func.func @transform_5(%arg0: i32) -> (i32, i32, i32) {
    %c0_i32 = arith.constant 0 : i32
    %c0_i32_0 = arith.constant 0 : i32
    %c0_i32_1 = arith.constant 0 : i32
    return %arg0, %c0_i32, %c0_i32_0 : i32, i32, i32
  }
}

module attributes {stable_mosaic.version = 11 : i64} {
  func.func @_bn_pad_kernel(%arg0: i32, %arg1: memref<1x8x384xbf16, #tpu.memory_space<vmem>>, %arg2: memref<8x1xf32, #tpu.memory_space<vmem>>, %arg3: memref<8x1xf32, #tpu.memory_space<vmem>>, %arg4: memref<1x384xi32, #tpu.memory_space<vmem>>, %arg5: memref<1x8x512xbf16, #tpu.memory_space<vmem>>) attributes {dimension_semantics = [#tpu.dimension_semantics<parallel>], iteration_bounds = array<i64: 2>, scalar_prefetch = 0 : i64, scratch_operands = 0 : i64, tpu.core_type = #tpu.core_type<tc>, window_params = [{transform_indices = @transform_0, window_bounds = array<i64: 1, 8, 384>}, {pipeline_mode = #tpu.pipeline_mode<synchronous>, transform_indices = @transform_1, window_bounds = array<i64: 8, 1>}, {pipeline_mode = #tpu.pipeline_mode<synchronous>, transform_indices = @transform_2, window_bounds = array<i64: 8, 1>}, {pipeline_mode = #tpu.pipeline_mode<synchronous>, transform_indices = @transform_3, window_bounds = array<i64: 1, 384>}, {transform_indices = @transform_4, window_bounds = array<i64: 1, 8, 512>}]} {
    %c0 = arith.constant 0 : index
    %c0_0 = arith.constant 0 : index
    %c0_1 = arith.constant 0 : index
    %0 = vector.load %arg1[%c0, %c0_0, %c0_1] : memref<1x8x384xbf16, #tpu.memory_space<vmem>>, vector<1x8x384xbf16>
    %1 = vector.shape_cast %0 : vector<1x8x384xbf16> to vector<8x384xbf16>
    %2 = arith.extf %1 : vector<8x384xbf16> to vector<8x384xf32>
    %c0_2 = arith.constant 0 : index
    %c0_3 = arith.constant 0 : index
    %3 = vector.load %arg2[%c0_2, %c0_3] : memref<8x1xf32, #tpu.memory_space<vmem>>, vector<8x1xf32>
    %4 = vector.broadcast %3 : vector<8x1xf32> to vector<8x384xf32>
    %5 = arith.mulf %2, %4 : vector<8x384xf32>
    %c0_4 = arith.constant 0 : index
    %c0_5 = arith.constant 0 : index
    %6 = vector.load %arg3[%c0_4, %c0_5] : memref<8x1xf32, #tpu.memory_space<vmem>>, vector<8x1xf32>
    %7 = vector.broadcast %6 : vector<8x1xf32> to vector<8x384xf32>
    %8 = arith.addf %5, %7 : vector<8x384xf32>
    %cst = arith.constant 0.00999999977 : f32
    %9 = vector.broadcast %cst : f32 to vector<8x384xf32>
    %10 = arith.mulf %9, %8 : vector<8x384xf32>
    %11 = arith.maximumf %8, %10 : vector<8x384xf32>
    %c0_6 = arith.constant 0 : index
    %c0_7 = arith.constant 0 : index
    %12 = vector.load %arg4[%c0_6, %c0_7] : memref<1x384xi32, #tpu.memory_space<vmem>>, vector<1x384xi32>
    %c0_i32 = arith.constant 0 : i32
    %13 = vector.broadcast %c0_i32 : i32 to vector<1x384xi32>
    %14 = arith.cmpi eq, %12, %13 : vector<1x384xi32>
    %cst_8 = arith.constant 0.000000e+00 : f32
    %15 = vector.broadcast %cst_8 : f32 to vector<8x1xf32>
    %16 = vector.extract_strided_slice %11 {offsets = [0, 1], sizes = [8, 383], strides = [1, 1]} : vector<8x384xf32> to vector<8x383xf32>
    %17 = tpu.concatenate %16, %15 in 1 : vector<8x383xf32>, vector<8x1xf32> -> vector<8x384xf32>
    %c17_i32 = arith.constant 17 : i32
    %18 = vector.broadcast %c17_i32 : i32 to vector<1x384xi32>
    %19 = arith.cmpi eq, %12, %18 : vector<1x384xi32>
    %cst_9 = arith.constant 0.000000e+00 : f32
    %20 = vector.broadcast %cst_9 : f32 to vector<8x3xf32>
    %21 = vector.extract_strided_slice %11 {offsets = [0, 0], sizes = [8, 381], strides = [1, 1]} : vector<8x384xf32> to vector<8x381xf32>
    %22 = tpu.concatenate %20, %21 in 1 : vector<8x3xf32>, vector<8x381xf32> -> vector<8x384xf32>
    %cst_10 = arith.constant 0.000000e+00 : f32
    %23 = vector.broadcast %cst_10 : f32 to vector<8x1xf32>
    %24 = vector.extract_strided_slice %11 {offsets = [0, 0], sizes = [8, 383], strides = [1, 1]} : vector<8x384xf32> to vector<8x383xf32>
    %25 = tpu.concatenate %23, %24 in 1 : vector<8x1xf32>, vector<8x383xf32> -> vector<8x384xf32>
    %26 = vector.shape_cast %19 : vector<1x384xi1> to vector<1x384xi1>
    %27 = vector.broadcast %26 : vector<1x384xi1> to vector<8x384xi1>
    %28 = arith.select %27, %22, %25 : vector<8x384xi1>, vector<8x384xf32>
    %29 = vector.shape_cast %14 : vector<1x384xi1> to vector<1x384xi1>
    %30 = vector.broadcast %29 : vector<1x384xi1> to vector<8x384xi1>
    %31 = arith.select %30, %17, %28 : vector<8x384xi1>, vector<8x384xf32>
    %32 = arith.truncf %31 : vector<8x384xf32> to vector<8x384xbf16>
    %c0_11 = arith.constant 0 : index
    %c0_12 = arith.constant 0 : index
    %c24 = arith.constant 24 : index
    %33 = vector.load %arg5[%c0_11, %c0_12, %c24] : memref<1x8x512xbf16, #tpu.memory_space<vmem>>, vector<1x8x384xbf16>
    %34 = vector.shape_cast %33 : vector<1x8x384xbf16> to vector<8x384xbf16>
    %35 = vector.shape_cast %32 : vector<8x384xbf16> to vector<1x8x384xbf16>
    tpu.vector_store %arg5[%c0_11, %c0_12, %c24], %35 {strides = array<i32>} : memref<1x8x512xbf16, #tpu.memory_space<vmem>>, vector<1x8x384xbf16>,
    %36 = vector.extract_strided_slice %32 {offsets = [0, 24], sizes = [8, 24], strides = [1, 1]} : vector<8x384xbf16> to vector<8x24xbf16>
    %c0_13 = arith.constant 0 : index
    %c0_14 = arith.constant 0 : index
    %c0_15 = arith.constant 0 : index
    %37 = vector.load %arg5[%c0_13, %c0_14, %c0_15] : memref<1x8x512xbf16, #tpu.memory_space<vmem>>, vector<1x8x24xbf16>
    %38 = vector.shape_cast %37 : vector<1x8x24xbf16> to vector<8x24xbf16>
    %39 = vector.shape_cast %36 : vector<8x24xbf16> to vector<1x8x24xbf16>
    tpu.vector_store %arg5[%c0_13, %c0_14, %c0_15], %39 {strides = array<i32>} : memref<1x8x512xbf16, #tpu.memory_space<vmem>>, vector<1x8x24xbf16>,
    %40 = vector.extract_strided_slice %32 {offsets = [0, 336], sizes = [8, 24], strides = [1, 1]} : vector<8x384xbf16> to vector<8x24xbf16>
    %c0_16 = arith.constant 0 : index
    %c0_17 = arith.constant 0 : index
    %c408 = arith.constant 408 : index
    %41 = vector.load %arg5[%c0_16, %c0_17, %c408] : memref<1x8x512xbf16, #tpu.memory_space<vmem>>, vector<1x8x24xbf16>
    %42 = vector.shape_cast %41 : vector<1x8x24xbf16> to vector<8x24xbf16>
    %43 = vector.shape_cast %40 : vector<8x24xbf16> to vector<1x8x24xbf16>
    tpu.vector_store %arg5[%c0_16, %c0_17, %c408], %43 {strides = array<i32>} : memref<1x8x512xbf16, #tpu.memory_space<vmem>>, vector<1x8x24xbf16>,
    %cst_18 = arith.constant 0.000000e+00 : bf16
    %44 = vector.broadcast %cst_18 : bf16 to vector<8x80xbf16>
    %c0_19 = arith.constant 0 : index
    %c0_20 = arith.constant 0 : index
    %c432 = arith.constant 432 : index
    %45 = vector.load %arg5[%c0_19, %c0_20, %c432] : memref<1x8x512xbf16, #tpu.memory_space<vmem>>, vector<1x8x80xbf16>
    %46 = vector.shape_cast %45 : vector<1x8x80xbf16> to vector<8x80xbf16>
    %47 = vector.shape_cast %44 : vector<8x80xbf16> to vector<1x8x80xbf16>
    tpu.vector_store %arg5[%c0_19, %c0_20, %c432], %47 {strides = array<i32>} : memref<1x8x512xbf16, #tpu.memory_space<vmem>>, vector<1x8x80xbf16>,
    return
  }
  func.func @transform_0(%arg0: i32) -> (i32, i32, i32) {
    %c0_i32 = arith.constant 0 : i32
    %c0_i32_0 = arith.constant 0 : i32
    %c0_i32_1 = arith.constant 0 : i32
    return %arg0, %c0_i32, %c0_i32_0 : i32, i32, i32
  }
  func.func @transform_1(%arg0: i32) -> (i32, i32) {
    %c0_i32 = arith.constant 0 : i32
    %c0_i32_0 = arith.constant 0 : i32
    %c0_i32_1 = arith.constant 0 : i32
    return %c0_i32, %c0_i32_0 : i32, i32
  }
  func.func @transform_2(%arg0: i32) -> (i32, i32) {
    %c0_i32 = arith.constant 0 : i32
    %c0_i32_0 = arith.constant 0 : i32
    %c0_i32_1 = arith.constant 0 : i32
    return %c0_i32, %c0_i32_0 : i32, i32
  }
  func.func @transform_3(%arg0: i32) -> (i32, i32) {
    %c0_i32 = arith.constant 0 : i32
    %c0_i32_0 = arith.constant 0 : i32
    %c0_i32_1 = arith.constant 0 : i32
    return %c0_i32, %c0_i32_0 : i32, i32
  }
  func.func @transform_4(%arg0: i32) -> (i32, i32, i32) {
    %c0_i32 = arith.constant 0 : i32
    %c0_i32_0 = arith.constant 0 : i32
    %c0_i32_1 = arith.constant 0 : i32
    return %arg0, %c0_i32, %c0_i32_0 : i32, i32, i32
  }
}

module attributes {stable_mosaic.version = 11 : i64} {
  func.func @_conv_stats_kernel(%arg0: i32, %arg1: memref<1x8x512xbf16, #tpu.memory_space<vmem>>, %arg2: memref<8x72xbf16, #tpu.memory_space<vmem>>, %arg3: memref<1x384xi32, #tpu.memory_space<vmem>>, %arg4: memref<1x8x384xbf16, #tpu.memory_space<vmem>>, %arg5: memref<1x8x1xf32, #tpu.memory_space<vmem>>, %arg6: memref<1x8x1xf32, #tpu.memory_space<vmem>>, %arg7: memref<72x384xf32, #tpu.memory_space<vmem>>) attributes {dimension_semantics = [#tpu.dimension_semantics<parallel>], iteration_bounds = array<i64: 2>, scalar_prefetch = 0 : i64, scratch_operands = 1 : i64, tpu.core_type = #tpu.core_type<tc>, window_params = [{transform_indices = @transform_0, window_bounds = array<i64: 1, 8, 512>}, {pipeline_mode = #tpu.pipeline_mode<synchronous>, transform_indices = @transform_1, window_bounds = array<i64: 8, 72>}, {pipeline_mode = #tpu.pipeline_mode<synchronous>, transform_indices = @transform_2, window_bounds = array<i64: 1, 384>}, {transform_indices = @transform_3, window_bounds = array<i64: 1, 8, 384>}, {transform_indices = @transform_4, window_bounds = array<i64: 1, 8, 1>}, {transform_indices = @transform_5, window_bounds = array<i64: 1, 8, 1>}]} {
    %c0 = arith.constant 0 : index
    %c0_0 = arith.constant 0 : index
    %c0_1 = arith.constant 0 : index
    %0 = vector.load %arg1[%c0, %c0_0, %c0_1] : memref<1x8x512xbf16, #tpu.memory_space<vmem>>, vector<1x8x384xbf16>
    %1 = vector.shape_cast %0 : vector<1x8x384xbf16> to vector<8x384xbf16>
    %2 = arith.extf %1 : vector<8x384xbf16> to vector<8x384xf32>
    %c0_2 = arith.constant 0 : index
    %c0_3 = arith.constant 0 : index
    %3 = vector.load %arg7[%c0_2, %c0_3] : memref<72x384xf32, #tpu.memory_space<vmem>>, vector<8x384xf32>
    tpu.vector_store %arg7[%c0_2, %c0_3], %2 {strides = array<i32>} : memref<72x384xf32, #tpu.memory_space<vmem>>, vector<8x384xf32>,
    %c0_4 = arith.constant 0 : index
    %c0_5 = arith.constant 0 : index
    %c1 = arith.constant 1 : index
    %4 = vector.load %arg1[%c0_4, %c0_5, %c1] : memref<1x8x512xbf16, #tpu.memory_space<vmem>>, vector<1x8x384xbf16>
    %5 = vector.shape_cast %4 : vector<1x8x384xbf16> to vector<8x384xbf16>
    %6 = arith.extf %5 : vector<8x384xbf16> to vector<8x384xf32>
    %c8 = arith.constant 8 : index
    %c0_6 = arith.constant 0 : index
    %7 = vector.load %arg7[%c8, %c0_6] : memref<72x384xf32, #tpu.memory_space<vmem>>, vector<8x384xf32>
    tpu.vector_store %arg7[%c8, %c0_6], %6 {strides = array<i32>} : memref<72x384xf32, #tpu.memory_space<vmem>>, vector<8x384xf32>,
    %c0_7 = arith.constant 0 : index
    %c0_8 = arith.constant 0 : index
    %c2 = arith.constant 2 : index
    %8 = vector.load %arg1[%c0_7, %c0_8, %c2] : memref<1x8x512xbf16, #tpu.memory_space<vmem>>, vector<1x8x384xbf16>
    %9 = vector.shape_cast %8 : vector<1x8x384xbf16> to vector<8x384xbf16>
    %10 = arith.extf %9 : vector<8x384xbf16> to vector<8x384xf32>
    %c16 = arith.constant 16 : index
    %c0_9 = arith.constant 0 : index
    %11 = vector.load %arg7[%c16, %c0_9] : memref<72x384xf32, #tpu.memory_space<vmem>>, vector<8x384xf32>
    tpu.vector_store %arg7[%c16, %c0_9], %10 {strides = array<i32>} : memref<72x384xf32, #tpu.memory_space<vmem>>, vector<8x384xf32>,
    %c0_10 = arith.constant 0 : index
    %c0_11 = arith.constant 0 : index
    %c24 = arith.constant 24 : index
    %12 = vector.load %arg1[%c0_10, %c0_11, %c24] : memref<1x8x512xbf16, #tpu.memory_space<vmem>>, vector<1x8x384xbf16>
    %13 = vector.shape_cast %12 : vector<1x8x384xbf16> to vector<8x384xbf16>
    %14 = arith.extf %13 : vector<8x384xbf16> to vector<8x384xf32>
    %c24_12 = arith.constant 24 : index
    %c0_13 = arith.constant 0 : index
    %15 = vector.load %arg7[%c24_12, %c0_13] : memref<72x384xf32, #tpu.memory_space<vmem>>, vector<8x384xf32>
    tpu.vector_store %arg7[%c24_12, %c0_13], %14 {strides = array<i32>} : memref<72x384xf32, #tpu.memory_space<vmem>>, vector<8x384xf32>,
    %c0_14 = arith.constant 0 : index
    %c0_15 = arith.constant 0 : index
    %c25 = arith.constant 25 : index
    %16 = vector.load %arg1[%c0_14, %c0_15, %c25] : memref<1x8x512xbf16, #tpu.memory_space<vmem>>, vector<1x8x384xbf16>
    %17 = vector.shape_cast %16 : vector<1x8x384xbf16> to vector<8x384xbf16>
    %18 = arith.extf %17 : vector<8x384xbf16> to vector<8x384xf32>
    %c32 = arith.constant 32 : index
    %c0_16 = arith.constant 0 : index
    %19 = vector.load %arg7[%c32, %c0_16] : memref<72x384xf32, #tpu.memory_space<vmem>>, vector<8x384xf32>
    tpu.vector_store %arg7[%c32, %c0_16], %18 {strides = array<i32>} : memref<72x384xf32, #tpu.memory_space<vmem>>, vector<8x384xf32>,
    %c0_17 = arith.constant 0 : index
    %c0_18 = arith.constant 0 : index
    %c26 = arith.constant 26 : index
    %20 = vector.load %arg1[%c0_17, %c0_18, %c26] : memref<1x8x512xbf16, #tpu.memory_space<vmem>>, vector<1x8x384xbf16>
    %21 = vector.shape_cast %20 : vector<1x8x384xbf16> to vector<8x384xbf16>
    %22 = arith.extf %21 : vector<8x384xbf16> to vector<8x384xf32>
    %c40 = arith.constant 40 : index
    %c0_19 = arith.constant 0 : index
    %23 = vector.load %arg7[%c40, %c0_19] : memref<72x384xf32, #tpu.memory_space<vmem>>, vector<8x384xf32>
    tpu.vector_store %arg7[%c40, %c0_19], %22 {strides = array<i32>} : memref<72x384xf32, #tpu.memory_space<vmem>>, vector<8x384xf32>,
    %c0_20 = arith.constant 0 : index
    %c0_21 = arith.constant 0 : index
    %c48 = arith.constant 48 : index
    %24 = vector.load %arg1[%c0_20, %c0_21, %c48] : memref<1x8x512xbf16, #tpu.memory_space<vmem>>, vector<1x8x384xbf16>
    %25 = vector.shape_cast %24 : vector<1x8x384xbf16> to vector<8x384xbf16>
    %26 = arith.extf %25 : vector<8x384xbf16> to vector<8x384xf32>
    %c48_22 = arith.constant 48 : index
    %c0_23 = arith.constant 0 : index
    %27 = vector.load %arg7[%c48_22, %c0_23] : memref<72x384xf32, #tpu.memory_space<vmem>>, vector<8x384xf32>
    tpu.vector_store %arg7[%c48_22, %c0_23], %26 {strides = array<i32>} : memref<72x384xf32, #tpu.memory_space<vmem>>, vector<8x384xf32>,
    %c0_24 = arith.constant 0 : index
    %c0_25 = arith.constant 0 : index
    %c49 = arith.constant 49 : index
    %28 = vector.load %arg1[%c0_24, %c0_25, %c49] : memref<1x8x512xbf16, #tpu.memory_space<vmem>>, vector<1x8x384xbf16>
    %29 = vector.shape_cast %28 : vector<1x8x384xbf16> to vector<8x384xbf16>
    %30 = arith.extf %29 : vector<8x384xbf16> to vector<8x384xf32>
    %c56 = arith.constant 56 : index
    %c0_26 = arith.constant 0 : index
    %31 = vector.load %arg7[%c56, %c0_26] : memref<72x384xf32, #tpu.memory_space<vmem>>, vector<8x384xf32>
    tpu.vector_store %arg7[%c56, %c0_26], %30 {strides = array<i32>} : memref<72x384xf32, #tpu.memory_space<vmem>>, vector<8x384xf32>,
    %c0_27 = arith.constant 0 : index
    %c0_28 = arith.constant 0 : index
    %c50 = arith.constant 50 : index
    %32 = vector.load %arg1[%c0_27, %c0_28, %c50] : memref<1x8x512xbf16, #tpu.memory_space<vmem>>, vector<1x8x384xbf16>
    %33 = vector.shape_cast %32 : vector<1x8x384xbf16> to vector<8x384xbf16>
    %34 = arith.extf %33 : vector<8x384xbf16> to vector<8x384xf32>
    %c64 = arith.constant 64 : index
    %c0_29 = arith.constant 0 : index
    %35 = vector.load %arg7[%c64, %c0_29] : memref<72x384xf32, #tpu.memory_space<vmem>>, vector<8x384xf32>
    tpu.vector_store %arg7[%c64, %c0_29], %34 {strides = array<i32>} : memref<72x384xf32, #tpu.memory_space<vmem>>, vector<8x384xf32>,
    %c0_30 = arith.constant 0 : index
    %c0_31 = arith.constant 0 : index
    %36 = vector.load %arg2[%c0_30, %c0_31] : memref<8x72xbf16, #tpu.memory_space<vmem>>, vector<8x72xbf16>
    %c0_32 = arith.constant 0 : index
    %c0_33 = arith.constant 0 : index
    %37 = vector.load %arg7[%c0_32, %c0_33] : memref<72x384xf32, #tpu.memory_space<vmem>>, vector<72x384xf32>
    %38 = arith.truncf %37 : vector<72x384xf32> to vector<72x384xbf16>
    %cst = arith.constant dense<0.000000e+00> : vector<8x384xf32>
    %39 = tpu.matmul %36, %38, %cst {dimension_numbers = #tpu.dot_dimension_numbers<[1], [0], [0], [1], [0, 0, 1, 1], [], []>} : vector<8x72xbf16>, vector<72x384xbf16>, vector<8x384xf32> -> vector<8x384xf32>
    %40 = arith.truncf %39 : vector<8x384xf32> to vector<8x384xbf16>
    %c0_34 = arith.constant 0 : index
    %c0_35 = arith.constant 0 : index
    %c0_36 = arith.constant 0 : index
    %41 = vector.load %arg4[%c0_34, %c0_35, %c0_36] : memref<1x8x384xbf16, #tpu.memory_space<vmem>>, vector<1x8x384xbf16>
    %42 = vector.shape_cast %41 : vector<1x8x384xbf16> to vector<8x384xbf16>
    %43 = vector.shape_cast %40 : vector<8x384xbf16> to vector<1x8x384xbf16>
    tpu.vector_store %arg4[%c0_34, %c0_35, %c0_36], %43 {strides = array<i32>} : memref<1x8x384xbf16, #tpu.memory_space<vmem>>, vector<1x8x384xbf16>,
    %c0_37 = arith.constant 0 : index
    %c0_38 = arith.constant 0 : index
    %44 = vector.load %arg3[%c0_37, %c0_38] : memref<1x384xi32, #tpu.memory_space<vmem>>, vector<1x384xi32>
    %c16_i32 = arith.constant 16 : i32
    %45 = vector.broadcast %c16_i32 : i32 to vector<1x384xi32>
    %46 = arith.cmpi slt, %44, %45 : vector<1x384xi32>
    %cst_39 = arith.constant 0.000000e+00 : f32
    %47 = vector.shape_cast %46 : vector<1x384xi1> to vector<1x384xi1>
    %48 = vector.broadcast %47 : vector<1x384xi1> to vector<8x384xi1>
    %49 = vector.broadcast %cst_39 : f32 to vector<8x384xf32>
    %50 = arith.select %48, %39, %49 : vector<8x384xi1>, vector<8x384xf32>
    %cst_40 = arith.constant dense<0.000000e+00> : vector<8xf32>
    %51 = vector.multi_reduction <add>, %50, %cst_40 [1] : vector<8x384xf32> to vector<8xf32>
    %52 = vector.shape_cast %51 : vector<8xf32> to vector<8x1xf32>
    %c0_41 = arith.constant 0 : index
    %c0_42 = arith.constant 0 : index
    %c0_43 = arith.constant 0 : index
    %53 = vector.load %arg5[%c0_41, %c0_42, %c0_43] : memref<1x8x1xf32, #tpu.memory_space<vmem>>, vector<1x8x1xf32>
    %54 = vector.shape_cast %53 : vector<1x8x1xf32> to vector<8x1xf32>
    %55 = vector.shape_cast %52 : vector<8x1xf32> to vector<1x8x1xf32>
    tpu.vector_store %arg5[%c0_41, %c0_42, %c0_43], %55 {strides = array<i32>} : memref<1x8x1xf32, #tpu.memory_space<vmem>>, vector<1x8x1xf32>,
    %56 = arith.mulf %50, %50 : vector<8x384xf32>
    %cst_44 = arith.constant dense<0.000000e+00> : vector<8xf32>
    %57 = vector.multi_reduction <add>, %56, %cst_44 [1] : vector<8x384xf32> to vector<8xf32>
    %58 = vector.shape_cast %57 : vector<8xf32> to vector<8x1xf32>
    %c0_45 = arith.constant 0 : index
    %c0_46 = arith.constant 0 : index
    %c0_47 = arith.constant 0 : index
    %59 = vector.load %arg6[%c0_45, %c0_46, %c0_47] : memref<1x8x1xf32, #tpu.memory_space<vmem>>, vector<1x8x1xf32>
    %60 = vector.shape_cast %59 : vector<1x8x1xf32> to vector<8x1xf32>
    %61 = vector.shape_cast %58 : vector<8x1xf32> to vector<1x8x1xf32>
    tpu.vector_store %arg6[%c0_45, %c0_46, %c0_47], %61 {strides = array<i32>} : memref<1x8x1xf32, #tpu.memory_space<vmem>>, vector<1x8x1xf32>,
    return
  }
  func.func @transform_0(%arg0: i32) -> (i32, i32, i32) {
    %c0_i32 = arith.constant 0 : i32
    %c0_i32_0 = arith.constant 0 : i32
    %c0_i32_1 = arith.constant 0 : i32
    return %arg0, %c0_i32, %c0_i32_0 : i32, i32, i32
  }
  func.func @transform_1(%arg0: i32) -> (i32, i32) {
    %c0_i32 = arith.constant 0 : i32
    %c0_i32_0 = arith.constant 0 : i32
    %c0_i32_1 = arith.constant 0 : i32
    return %c0_i32, %c0_i32_0 : i32, i32
  }
  func.func @transform_2(%arg0: i32) -> (i32, i32) {
    %c0_i32 = arith.constant 0 : i32
    %c0_i32_0 = arith.constant 0 : i32
    %c0_i32_1 = arith.constant 0 : i32
    return %c0_i32, %c0_i32_0 : i32, i32
  }
  func.func @transform_3(%arg0: i32) -> (i32, i32, i32) {
    %c0_i32 = arith.constant 0 : i32
    %c0_i32_0 = arith.constant 0 : i32
    %c0_i32_1 = arith.constant 0 : i32
    return %arg0, %c0_i32, %c0_i32_0 : i32, i32, i32
  }
  func.func @transform_4(%arg0: i32) -> (i32, i32, i32) {
    %c0_i32 = arith.constant 0 : i32
    %c0_i32_0 = arith.constant 0 : i32
    %c0_i32_1 = arith.constant 0 : i32
    return %arg0, %c0_i32, %c0_i32_0 : i32, i32, i32
  }
  func.func @transform_5(%arg0: i32) -> (i32, i32, i32) {
    %c0_i32 = arith.constant 0 : i32
    %c0_i32_0 = arith.constant 0 : i32
    %c0_i32_1 = arith.constant 0 : i32
    return %arg0, %c0_i32, %c0_i32_0 : i32, i32, i32
  }
}

module attributes {stable_mosaic.version = 11 : i64} {
  func.func @_bn_crop_kernel(%arg0: i32, %arg1: memref<1x8x384xbf16, #tpu.memory_space<vmem>>, %arg2: memref<8x1xf32, #tpu.memory_space<vmem>>, %arg3: memref<8x1xf32, #tpu.memory_space<vmem>>, %arg4: memref<1x8x16x16xf32, #tpu.memory_space<vmem>>) attributes {dimension_semantics = [#tpu.dimension_semantics<parallel>], iteration_bounds = array<i64: 2>, scalar_prefetch = 0 : i64, scratch_operands = 0 : i64, tpu.core_type = #tpu.core_type<tc>, window_params = [{transform_indices = @transform_0, window_bounds = array<i64: 1, 8, 384>}, {pipeline_mode = #tpu.pipeline_mode<synchronous>, transform_indices = @transform_1, window_bounds = array<i64: 8, 1>}, {pipeline_mode = #tpu.pipeline_mode<synchronous>, transform_indices = @transform_2, window_bounds = array<i64: 8, 1>}, {transform_indices = @transform_3, window_bounds = array<i64: 1, 8, 16, 16>}]} {
    %c0 = arith.constant 0 : index
    %c0_0 = arith.constant 0 : index
    %c0_1 = arith.constant 0 : index
    %0 = vector.load %arg1[%c0, %c0_0, %c0_1] : memref<1x8x384xbf16, #tpu.memory_space<vmem>>, vector<1x8x384xbf16>
    %1 = vector.shape_cast %0 : vector<1x8x384xbf16> to vector<8x384xbf16>
    %2 = arith.extf %1 : vector<8x384xbf16> to vector<8x384xf32>
    %c0_2 = arith.constant 0 : index
    %c0_3 = arith.constant 0 : index
    %3 = vector.load %arg2[%c0_2, %c0_3] : memref<8x1xf32, #tpu.memory_space<vmem>>, vector<8x1xf32>
    %4 = vector.broadcast %3 : vector<8x1xf32> to vector<8x384xf32>
    %5 = arith.mulf %2, %4 : vector<8x384xf32>
    %c0_4 = arith.constant 0 : index
    %c0_5 = arith.constant 0 : index
    %6 = vector.load %arg3[%c0_4, %c0_5] : memref<8x1xf32, #tpu.memory_space<vmem>>, vector<8x1xf32>
    %7 = vector.broadcast %6 : vector<8x1xf32> to vector<8x384xf32>
    %8 = arith.addf %5, %7 : vector<8x384xf32>
    %cst = arith.constant 0.00999999977 : f32
    %9 = vector.broadcast %cst : f32 to vector<8x384xf32>
    %10 = arith.mulf %9, %8 : vector<8x384xf32>
    %11 = arith.maximumf %8, %10 : vector<8x384xf32>
    %12 = vector.extract_strided_slice %11 {offsets = [0, 0], sizes = [8, 16], strides = [1, 1]} : vector<8x384xf32> to vector<8x16xf32>
    %c0_6 = arith.constant 0 : index
    %c0_7 = arith.constant 0 : index
    %c0_8 = arith.constant 0 : index
    %c0_9 = arith.constant 0 : index
    %13 = vector.load %arg4[%c0_6, %c0_7, %c0_8, %c0_9] : memref<1x8x16x16xf32, #tpu.memory_space<vmem>>, vector<1x8x1x16xf32>
    %14 = vector.shape_cast %13 : vector<1x8x1x16xf32> to vector<8x16xf32>
    %15 = vector.shape_cast %12 : vector<8x16xf32> to vector<1x8x1x16xf32>
    tpu.vector_store %arg4[%c0_6, %c0_7, %c0_8, %c0_9], %15 {strides = array<i32>} : memref<1x8x16x16xf32, #tpu.memory_space<vmem>>, vector<1x8x1x16xf32>,
    %16 = vector.extract_strided_slice %11 {offsets = [0, 24], sizes = [8, 16], strides = [1, 1]} : vector<8x384xf32> to vector<8x16xf32>
    %c0_10 = arith.constant 0 : index
    %c0_11 = arith.constant 0 : index
    %c1 = arith.constant 1 : index
    %c0_12 = arith.constant 0 : index
    %17 = vector.load %arg4[%c0_10, %c0_11, %c1, %c0_12] : memref<1x8x16x16xf32, #tpu.memory_space<vmem>>, vector<1x8x1x16xf32>
    %18 = vector.shape_cast %17 : vector<1x8x1x16xf32> to vector<8x16xf32>
    %19 = vector.shape_cast %16 : vector<8x16xf32> to vector<1x8x1x16xf32>
    tpu.vector_store %arg4[%c0_10, %c0_11, %c1, %c0_12], %19 {strides = array<i32>} : memref<1x8x16x16xf32, #tpu.memory_space<vmem>>, vector<1x8x1x16xf32>,
    %20 = vector.extract_strided_slice %11 {offsets = [0, 48], sizes = [8, 16], strides = [1, 1]} : vector<8x384xf32> to vector<8x16xf32>
    %c0_13 = arith.constant 0 : index
    %c0_14 = arith.constant 0 : index
    %c2 = arith.constant 2 : index
    %c0_15 = arith.constant 0 : index
    %21 = vector.load %arg4[%c0_13, %c0_14, %c2, %c0_15] : memref<1x8x16x16xf32, #tpu.memory_space<vmem>>, vector<1x8x1x16xf32>
    %22 = vector.shape_cast %21 : vector<1x8x1x16xf32> to vector<8x16xf32>
    %23 = vector.shape_cast %20 : vector<8x16xf32> to vector<1x8x1x16xf32>
    tpu.vector_store %arg4[%c0_13, %c0_14, %c2, %c0_15], %23 {strides = array<i32>} : memref<1x8x16x16xf32, #tpu.memory_space<vmem>>, vector<1x8x1x16xf32>,
    %24 = vector.extract_strided_slice %11 {offsets = [0, 72], sizes = [8, 16], strides = [1, 1]} : vector<8x384xf32> to vector<8x16xf32>
    %c0_16 = arith.constant 0 : index
    %c0_17 = arith.constant 0 : index
    %c3 = arith.constant 3 : index
    %c0_18 = arith.constant 0 : index
    %25 = vector.load %arg4[%c0_16, %c0_17, %c3, %c0_18] : memref<1x8x16x16xf32, #tpu.memory_space<vmem>>, vector<1x8x1x16xf32>
    %26 = vector.shape_cast %25 : vector<1x8x1x16xf32> to vector<8x16xf32>
    %27 = vector.shape_cast %24 : vector<8x16xf32> to vector<1x8x1x16xf32>
    tpu.vector_store %arg4[%c0_16, %c0_17, %c3, %c0_18], %27 {strides = array<i32>} : memref<1x8x16x16xf32, #tpu.memory_space<vmem>>, vector<1x8x1x16xf32>,
    %28 = vector.extract_strided_slice %11 {offsets = [0, 96], sizes = [8, 16], strides = [1, 1]} : vector<8x384xf32> to vector<8x16xf32>
    %c0_19 = arith.constant 0 : index
    %c0_20 = arith.constant 0 : index
    %c4 = arith.constant 4 : index
    %c0_21 = arith.constant 0 : index
    %29 = vector.load %arg4[%c0_19, %c0_20, %c4, %c0_21] : memref<1x8x16x16xf32, #tpu.memory_space<vmem>>, vector<1x8x1x16xf32>
    %30 = vector.shape_cast %29 : vector<1x8x1x16xf32> to vector<8x16xf32>
    %31 = vector.shape_cast %28 : vector<8x16xf32> to vector<1x8x1x16xf32>
    tpu.vector_store %arg4[%c0_19, %c0_20, %c4, %c0_21], %31 {strides = array<i32>} : memref<1x8x16x16xf32, #tpu.memory_space<vmem>>, vector<1x8x1x16xf32>,
    %32 = vector.extract_strided_slice %11 {offsets = [0, 120], sizes = [8, 16], strides = [1, 1]} : vector<8x384xf32> to vector<8x16xf32>
    %c0_22 = arith.constant 0 : index
    %c0_23 = arith.constant 0 : index
    %c5 = arith.constant 5 : index
    %c0_24 = arith.constant 0 : index
    %33 = vector.load %arg4[%c0_22, %c0_23, %c5, %c0_24] : memref<1x8x16x16xf32, #tpu.memory_space<vmem>>, vector<1x8x1x16xf32>
    %34 = vector.shape_cast %33 : vector<1x8x1x16xf32> to vector<8x16xf32>
    %35 = vector.shape_cast %32 : vector<8x16xf32> to vector<1x8x1x16xf32>
    tpu.vector_store %arg4[%c0_22, %c0_23, %c5, %c0_24], %35 {strides = array<i32>} : memref<1x8x16x16xf32, #tpu.memory_space<vmem>>, vector<1x8x1x16xf32>,
    %36 = vector.extract_strided_slice %11 {offsets = [0, 144], sizes = [8, 16], strides = [1, 1]} : vector<8x384xf32> to vector<8x16xf32>
    %c0_25 = arith.constant 0 : index
    %c0_26 = arith.constant 0 : index
    %c6 = arith.constant 6 : index
    %c0_27 = arith.constant 0 : index
    %37 = vector.load %arg4[%c0_25, %c0_26, %c6, %c0_27] : memref<1x8x16x16xf32, #tpu.memory_space<vmem>>, vector<1x8x1x16xf32>
    %38 = vector.shape_cast %37 : vector<1x8x1x16xf32> to vector<8x16xf32>
    %39 = vector.shape_cast %36 : vector<8x16xf32> to vector<1x8x1x16xf32>
    tpu.vector_store %arg4[%c0_25, %c0_26, %c6, %c0_27], %39 {strides = array<i32>} : memref<1x8x16x16xf32, #tpu.memory_space<vmem>>, vector<1x8x1x16xf32>,
    %40 = vector.extract_strided_slice %11 {offsets = [0, 168], sizes = [8, 16], strides = [1, 1]} : vector<8x384xf32> to vector<8x16xf32>
    %c0_28 = arith.constant 0 : index
    %c0_29 = arith.constant 0 : index
    %c7 = arith.constant 7 : index
    %c0_30 = arith.constant 0 : index
    %41 = vector.load %arg4[%c0_28, %c0_29, %c7, %c0_30] : memref<1x8x16x16xf32, #tpu.memory_space<vmem>>, vector<1x8x1x16xf32>
    %42 = vector.shape_cast %41 : vector<1x8x1x16xf32> to vector<8x16xf32>
    %43 = vector.shape_cast %40 : vector<8x16xf32> to vector<1x8x1x16xf32>
    tpu.vector_store %arg4[%c0_28, %c0_29, %c7, %c0_30], %43 {strides = array<i32>} : memref<1x8x16x16xf32, #tpu.memory_space<vmem>>, vector<1x8x1x16xf32>,
    %44 = vector.extract_strided_slice %11 {offsets = [0, 192], sizes = [8, 16], strides = [1, 1]} : vector<8x384xf32> to vector<8x16xf32>
    %c0_31 = arith.constant 0 : index
    %c0_32 = arith.constant 0 : index
    %c8 = arith.constant 8 : index
    %c0_33 = arith.constant 0 : index
    %45 = vector.load %arg4[%c0_31, %c0_32, %c8, %c0_33] : memref<1x8x16x16xf32, #tpu.memory_space<vmem>>, vector<1x8x1x16xf32>
    %46 = vector.shape_cast %45 : vector<1x8x1x16xf32> to vector<8x16xf32>
    %47 = vector.shape_cast %44 : vector<8x16xf32> to vector<1x8x1x16xf32>
    tpu.vector_store %arg4[%c0_31, %c0_32, %c8, %c0_33], %47 {strides = array<i32>} : memref<1x8x16x16xf32, #tpu.memory_space<vmem>>, vector<1x8x1x16xf32>,
    %48 = vector.extract_strided_slice %11 {offsets = [0, 216], sizes = [8, 16], strides = [1, 1]} : vector<8x384xf32> to vector<8x16xf32>
    %c0_34 = arith.constant 0 : index
    %c0_35 = arith.constant 0 : index
    %c9 = arith.constant 9 : index
    %c0_36 = arith.constant 0 : index
    %49 = vector.load %arg4[%c0_34, %c0_35, %c9, %c0_36] : memref<1x8x16x16xf32, #tpu.memory_space<vmem>>, vector<1x8x1x16xf32>
    %50 = vector.shape_cast %49 : vector<1x8x1x16xf32> to vector<8x16xf32>
    %51 = vector.shape_cast %48 : vector<8x16xf32> to vector<1x8x1x16xf32>
    tpu.vector_store %arg4[%c0_34, %c0_35, %c9, %c0_36], %51 {strides = array<i32>} : memref<1x8x16x16xf32, #tpu.memory_space<vmem>>, vector<1x8x1x16xf32>,
    %52 = vector.extract_strided_slice %11 {offsets = [0, 240], sizes = [8, 16], strides = [1, 1]} : vector<8x384xf32> to vector<8x16xf32>
    %c0_37 = arith.constant 0 : index
    %c0_38 = arith.constant 0 : index
    %c10 = arith.constant 10 : index
    %c0_39 = arith.constant 0 : index
    %53 = vector.load %arg4[%c0_37, %c0_38, %c10, %c0_39] : memref<1x8x16x16xf32, #tpu.memory_space<vmem>>, vector<1x8x1x16xf32>
    %54 = vector.shape_cast %53 : vector<1x8x1x16xf32> to vector<8x16xf32>
    %55 = vector.shape_cast %52 : vector<8x16xf32> to vector<1x8x1x16xf32>
    tpu.vector_store %arg4[%c0_37, %c0_38, %c10, %c0_39], %55 {strides = array<i32>} : memref<1x8x16x16xf32, #tpu.memory_space<vmem>>, vector<1x8x1x16xf32>,
    %56 = vector.extract_strided_slice %11 {offsets = [0, 264], sizes = [8, 16], strides = [1, 1]} : vector<8x384xf32> to vector<8x16xf32>
    %c0_40 = arith.constant 0 : index
    %c0_41 = arith.constant 0 : index
    %c11 = arith.constant 11 : index
    %c0_42 = arith.constant 0 : index
    %57 = vector.load %arg4[%c0_40, %c0_41, %c11, %c0_42] : memref<1x8x16x16xf32, #tpu.memory_space<vmem>>, vector<1x8x1x16xf32>
    %58 = vector.shape_cast %57 : vector<1x8x1x16xf32> to vector<8x16xf32>
    %59 = vector.shape_cast %56 : vector<8x16xf32> to vector<1x8x1x16xf32>
    tpu.vector_store %arg4[%c0_40, %c0_41, %c11, %c0_42], %59 {strides = array<i32>} : memref<1x8x16x16xf32, #tpu.memory_space<vmem>>, vector<1x8x1x16xf32>,
    %60 = vector.extract_strided_slice %11 {offsets = [0, 288], sizes = [8, 16], strides = [1, 1]} : vector<8x384xf32> to vector<8x16xf32>
    %c0_43 = arith.constant 0 : index
    %c0_44 = arith.constant 0 : index
    %c12 = arith.constant 12 : index
    %c0_45 = arith.constant 0 : index
    %61 = vector.load %arg4[%c0_43, %c0_44, %c12, %c0_45] : memref<1x8x16x16xf32, #tpu.memory_space<vmem>>, vector<1x8x1x16xf32>
    %62 = vector.shape_cast %61 : vector<1x8x1x16xf32> to vector<8x16xf32>
    %63 = vector.shape_cast %60 : vector<8x16xf32> to vector<1x8x1x16xf32>
    tpu.vector_store %arg4[%c0_43, %c0_44, %c12, %c0_45], %63 {strides = array<i32>} : memref<1x8x16x16xf32, #tpu.memory_space<vmem>>, vector<1x8x1x16xf32>,
    %64 = vector.extract_strided_slice %11 {offsets = [0, 312], sizes = [8, 16], strides = [1, 1]} : vector<8x384xf32> to vector<8x16xf32>
    %c0_46 = arith.constant 0 : index
    %c0_47 = arith.constant 0 : index
    %c13 = arith.constant 13 : index
    %c0_48 = arith.constant 0 : index
    %65 = vector.load %arg4[%c0_46, %c0_47, %c13, %c0_48] : memref<1x8x16x16xf32, #tpu.memory_space<vmem>>, vector<1x8x1x16xf32>
    %66 = vector.shape_cast %65 : vector<1x8x1x16xf32> to vector<8x16xf32>
    %67 = vector.shape_cast %64 : vector<8x16xf32> to vector<1x8x1x16xf32>
    tpu.vector_store %arg4[%c0_46, %c0_47, %c13, %c0_48], %67 {strides = array<i32>} : memref<1x8x16x16xf32, #tpu.memory_space<vmem>>, vector<1x8x1x16xf32>,
    %68 = vector.extract_strided_slice %11 {offsets = [0, 336], sizes = [8, 16], strides = [1, 1]} : vector<8x384xf32> to vector<8x16xf32>
    %c0_49 = arith.constant 0 : index
    %c0_50 = arith.constant 0 : index
    %c14 = arith.constant 14 : index
    %c0_51 = arith.constant 0 : index
    %69 = vector.load %arg4[%c0_49, %c0_50, %c14, %c0_51] : memref<1x8x16x16xf32, #tpu.memory_space<vmem>>, vector<1x8x1x16xf32>
    %70 = vector.shape_cast %69 : vector<1x8x1x16xf32> to vector<8x16xf32>
    %71 = vector.shape_cast %68 : vector<8x16xf32> to vector<1x8x1x16xf32>
    tpu.vector_store %arg4[%c0_49, %c0_50, %c14, %c0_51], %71 {strides = array<i32>} : memref<1x8x16x16xf32, #tpu.memory_space<vmem>>, vector<1x8x1x16xf32>,
    %72 = vector.extract_strided_slice %11 {offsets = [0, 360], sizes = [8, 16], strides = [1, 1]} : vector<8x384xf32> to vector<8x16xf32>
    %c0_52 = arith.constant 0 : index
    %c0_53 = arith.constant 0 : index
    %c15 = arith.constant 15 : index
    %c0_54 = arith.constant 0 : index
    %73 = vector.load %arg4[%c0_52, %c0_53, %c15, %c0_54] : memref<1x8x16x16xf32, #tpu.memory_space<vmem>>, vector<1x8x1x16xf32>
    %74 = vector.shape_cast %73 : vector<1x8x1x16xf32> to vector<8x16xf32>
    %75 = vector.shape_cast %72 : vector<8x16xf32> to vector<1x8x1x16xf32>
    tpu.vector_store %arg4[%c0_52, %c0_53, %c15, %c0_54], %75 {strides = array<i32>} : memref<1x8x16x16xf32, #tpu.memory_space<vmem>>, vector<1x8x1x16xf32>,
    return
  }
  func.func @transform_0(%arg0: i32) -> (i32, i32, i32) {
    %c0_i32 = arith.constant 0 : i32
    %c0_i32_0 = arith.constant 0 : i32
    %c0_i32_1 = arith.constant 0 : i32
    return %arg0, %c0_i32, %c0_i32_0 : i32, i32, i32
  }
  func.func @transform_1(%arg0: i32) -> (i32, i32) {
    %c0_i32 = arith.constant 0 : i32
    %c0_i32_0 = arith.constant 0 : i32
    %c0_i32_1 = arith.constant 0 : i32
    return %c0_i32, %c0_i32_0 : i32, i32
  }
  func.func @transform_2(%arg0: i32) -> (i32, i32) {
    %c0_i32 = arith.constant 0 : i32
    %c0_i32_0 = arith.constant 0 : i32
    %c0_i32_1 = arith.constant 0 : i32
    return %c0_i32, %c0_i32_0 : i32, i32
  }
  func.func @transform_3(%arg0: i32) -> (i32, i32, i32, i32) {
    %c0_i32 = arith.constant 0 : i32
    %c0_i32_0 = arith.constant 0 : i32
    %c0_i32_1 = arith.constant 0 : i32
    %c0_i32_2 = arith.constant 0 : i32
    return %arg0, %c0_i32, %c0_i32_0, %c0_i32_1 : i32, i32, i32, i32
  }
}

</mosaic_0001>

<bundles_post_ra>
// kernel: conv_block_forward.5
= control target key start
LH: loop header
LB: loop body
LE: loop exit
PB: predicated region body
PF: predicated region fallthrough
CT: control target
= control target key end

     0   :  { %s500_s15 = smov 0   ;;  %s543_s0 = inlined_call_operand.vmem [shape: bf16[2,8,384], index: 0, kind: input, shape index: {}]   ;;  %s544_s1 = inlined_call_operand.vmem [shape: f32[8,1], index: 1, kind: input, shape index: {}]   ;;  %s545_s2 = inlined_call_operand.vmem [shape: f32[8,1], index: 2, kind: input, shape index: {}]   ;;  %s546_s3 = inlined_call_operand.vmem [shape: s32[1,384], index: 3, kind: input, shape index: {}]   ;;  %s547_s4 = inlined_call_operand.vmem [shape: bf16[2,8,512], index: 4, kind: output, shape index: {}]  }
   0x1 LB: > { %s411_s16 = sadd.s32 4294967295, %s466_s15   ;;  %p415_p0 = scmp.ge.s32.totalorder %s466_s15, 1  ;;  %s466_s15 = sphi %s500_s15, %s14_s15  }
   0x2   : > { %p162_p1 = scmp.lt.s32.totalorder %s466_s15, 3 }
   0x4   : > { %p163_p2 = pnand %p415_p0, %p162_p1 }
   0x5   : > { %v204_v0 = vld [vmem:[%s544_s1] sm:$0xff] (!%p163_p2)  ;;  %v468_v1 = vmov (!%p163_p2), 0   ;;  %p188_p3 = scmp.lt.s32.totalorder (!%p163_p2), %s411_s16, 1  ;;  %s469_s25 = smov (!%p163_p2), 1   ;;  %v274_v23 = vlaneseq (!%p163_p2)  ;;  %vm266_vm2 = vcmask (!%p163_p2), 7168   ;;  %vm253_vm3 = vcmask (!%p163_p2), 23552  }
   0x6   : > { %166 = sbr.rel (%p163_p2) target bundleno = 401 (0x191), region = 36  ;;  %444 = vset.pattern.permute.xlu0 (!%p163_p2), %v468_v1  ;;  %v213_v2 = vld [vmem:[%s545_s2] sm:$0xff] (!%p163_p2)  ;;  %s470_s26 = smov (!%p163_p2), 3   ;;  %vm239_vm4 = vcmask (!%p163_p2), 1039360   ;;  %vm335_vm11 = vcmask (!%p163_p2), 1043648   ;;  %vm336_vm12 = vcmask (!%p163_p2), 1047556  }
   0x7   : > { %207 = vperm.xlu0 (!%p163_p2), %444, %v204_v0   ;;  %s471_s27 = smov (!%p163_p2), 127   ;;  %v228_v24 = vld [vmem:[%s546_s3] sm:$0x7] (!%p163_p2)  ;;  %v275_v25 = vshrl.u32 (!%p163_p2), %v274_v23, 7  ;;  %s472_s30 = smov (!%p163_p2), 24   ;;  %vm330_vm13 = vcmask (!%p163_p2), 1043456  }
   0x8   : > { %vm246_vm0 = vcmp.eq.s32.totalorder (!%p163_p2), %v228_v24, 17  ;;  %vm229_vm1 = vcmp.eq.s32.totalorder (!%p163_p2), %v228_v24, 0  ;;  %s473_s5 = smov (!%p163_p2), 104   ;;  %s474_s6 = smov (!%p163_p2), 72   ;;  %vm340_vm14 = vcmask (!%p163_p2), 195588   ;;  %vm328_vm15 = vcmask (!%p163_p2), 195584  }
   0x9   : > { %v276_v27 = vsub.s32 (!%p163_p2), 0, %v275_v25  ;;  %v273_v29 = vsel (!%p163_p2), %vm246_vm0, 1, %v468_v1  ;;  %v280_v30 = vsub.s32 (!%p163_p2), 1, %v275_v25  ;;  %v284_v31 = vsub.s32 (!%p163_p2), 2, %v275_v25  ;;  %vm337_vm0 = vmor (!%p163_p2), %vm336_vm12, %vm335_vm11 }
   0xa   : > { %v292_v32 = vsel (!%p163_p2), %vm229_vm1, 1, %v468_v1  ;;  %vm341_vm1 = vmor (!%p163_p2), %vm340_vm14, %vm330_vm13 }
   0xb   : > { %216 = vperm.xlu0 (!%p163_p2), %444, %v213_v2   ;;  %v277_v33 = vrot.slane (!%p163_p2), %v273_v29, %v276_v27  ;;  %v281_v38 = vrot.slane (!%p163_p2), %v273_v29, %v280_v30  ;;  %v285_v41 = vrot.slane (!%p163_p2), %v273_v29, %v284_v31  ;;  %v296_v42 = vrot.slane (!%p163_p2), %v292_v32, %v276_v27 }
   0xc   : > { %v300_v45 = vrot.slane (!%p163_p2), %v292_v32, %v280_v30  ;;  %v304_v46 = vrot.slane (!%p163_p2), %v292_v32, %v284_v31 }
   0xd   : > { %s549_s16 = smov (!%p188_p3, %s411_s16), 1  ;;  %vm286_vm5 = vcmp.eq.s32.totalorder %v277_v33, 1  ;;  %vm287_vm6 = vcmp.eq.s32.totalorder %v281_v38, 1  ;;  %vm288_vm7 = vcmp.eq.s32.totalorder %v285_v41, 1  ;;  %vm305_vm10 = vcmp.eq.s32.totalorder %v296_v42, 1 }
   0xe   : > { %s428_s21 = smul.u32 12, %s549_s16  ;;  %vm306_vm8 = vcmp.eq.s32.totalorder %v300_v45, 1  ;;  %vm307_vm9 = vcmp.eq.s32.totalorder %v304_v46, 1  ;;  %s424_s7 = sshll.u32 %s549_s16, 4 }
   0xf   : > { %s197_s10 = scalar_lea.vmem %s547_s4, %s424_s7 }
  0x10   : > { %s192_s24 = scalar_lea.vmem %s543_s0, %s428_s21 }
  0x11   : > { %v199_v3 = vld [vmem:[%s192_s24] sm:$0xff]  ;;  %v200_v4 = vld [vmem:[%s192_s24 + $0x8] sm:$0xf] }
  0x12   : > { %v201_v5 = vunpack.c.l.bf16 %v199_v3  ;;  %v202_v6 = vunpack.c.h.bf16 %v199_v3  ;;  %v203_v8 = vunpack.c.l.bf16 %v200_v4 }
  0x86   : > { %v208_v7 = vpop.permute.xlu0 %207 }
  0x87   : > { %v210_v9 = vmul.f32 %v208_v7, %v201_v5  ;;  %v211_v10 = vmul.f32 %v208_v7, %v202_v6  ;;  %v212_v12 = vmul.f32 %v208_v7, %v203_v8 }
  0x8a   : > { %v217_v11 = vpop.permute.xlu0 %216 }
  0x8b   : > { %v219_v13 = vadd.f32 %v217_v11, %v210_v9  ;;  %v220_v14 = vadd.f32 %v217_v11, %v211_v10  ;;  %v221_v15 = vadd.f32 %v217_v11, %v212_v12 }
  0x8d   : > { %v222_v16 = vmul.f32 0.01, %v219_v13  ;;  %v223_v17 = vmul.f32 0.01, %v220_v14  ;;  %v224_v20 = vmul.f32 0.01, %v221_v15 }
  0x8f   : > { %v225_v18 = vmax.f32 %v219_v13, %v222_v16  ;;  %v226_v19 = vmax.f32 %v220_v14, %v223_v17  ;;  %v227_v22 = vmax.f32 %v221_v15, %v224_v20 }
  0x91   : > { %v450_v21 = vpack.i.bf16 %v226_v19, %v225_v18 }
  0x93   : > { %451 = vrot.lane.b32.xlu0 %v450_v21, %s469_s25  ;;  %446 = vrot.lane.b32.xlu1 %v450_v21, %s470_s26 }
  0x97   : > { %456 = vrot.lane.b32.xlu0 %v450_v21, %s471_s27  ;;  %251 = vrot.lane.b32.xlu1 %v227_v22, %s470_s26 }
  0x9b   : > { %264 = vrot.lane.b32.xlu1 %v227_v22, %s469_s25 }
  0x9f   : > { %237 = vrot.lane.b32.xlu1 %v227_v22, %s471_s27 }
 0x105   : > { %v452_v26 = vpop.permute.xlu0 %451  ;;  %v447_v28 = vpop.permute.xlu1 %446 }
 0x106   : > { %v453_v36 = vunpack.i.l.bf16 %v452_v26  ;;  %v448_v37 = vunpack.i.l.bf16 %v447_v28  ;;  %v454_v39 = vunpack.i.h.bf16 %v452_v26  ;;  %v449_v40 = vunpack.i.h.bf16 %v447_v28 }
 0x108   : > { %v272_v48 = vsel %vm266_vm2, 0.0, %v453_v36  ;;  %v259_v49 = vsel %vm253_vm3, 0.0, %v448_v37  ;;  %v267_v50 = vsel %vm266_vm2, %v453_v36, %v454_v39  ;;  %v254_v51 = vsel %vm253_vm3, %v448_v37, %v449_v40 }
 0x109   : > { %v457_v34 = vpop.permute.xlu0 %456  ;;  %v252_v35 = vpop.permute.xlu1 %251  ;;  %v289_v54 = vsel %vm286_vm5, %v259_v49, %v272_v48  ;;  %v290_v60 = vsel %vm287_vm6, %v254_v51, %v267_v50 }
 0x10a   : > { %v459_v43 = vunpack.i.h.bf16 %v457_v34  ;;  %v458_v44 = vunpack.i.l.bf16 %v457_v34  ;;  %v255_v55 = vsel %vm253_vm3, %v449_v40, %v252_v35  ;;  %vm352_vm3 = vcmask 388288  }
 0x10c   : > { %v240_v53 = vsel %vm239_vm4, %v458_v44, %v459_v43 }
 0x10d   : > { %v265_v47 = vpop.permute.xlu1 %264  ;;  %v308_v63 = vsel %vm305_vm10, %v240_v53, %v289_v54 }
 0x10e   : > { %v268_v52 = vsel %vm266_vm2, %v454_v39, %v265_v47  ;;  %v427_v3 = vpack.c.bf16 %v308_v63, %v308_v63  ;;  %vm347_vm2 = vcmask 191488  }
 0x10f   : > { %v291_v57 = vsel %vm288_vm7, %v255_v55, %v268_v52 }
 0x111   : > { %v238_v56 = vpop.permute.xlu1 %237 }
 0x112   : > { %v241_v58 = vsel %vm239_vm4, %v459_v43, %v238_v56  ;;  %v245_v59 = vsel %vm239_vm4, %v238_v56, 0.0  ;;  %vm354_vm4 = vcmask 1043840  }
 0x113   : > { %v309_v61 = vsel %vm306_vm8, %v241_v58, %v290_v60  ;;  %v310_v62 = vsel %vm307_vm9, %v245_v59, %v291_v57 }
 0x114   : > { %v426_v0 = vpack.c.bf16 %v310_v62, %v310_v62  ;;  %v425_v2 = vpack.c.bf16 %v309_v61, %v308_v63 }
 0x116   : > { %324 = vrot.lane.b32.xlu1 %v426_v0, %s472_s30  ;;  %322 = vrot.lane.b32.xlu0 %v425_v2, %s472_s30 }
 0x11a   : > { %344 = vrot.lane.b32.xlu1 %v427_v3, %s473_s5  ;;  %349 = vrot.lane.b32.xlu0 %v426_v0, %s474_s6 }
 0x188   : > { %v325_v4 = vpop.permute.xlu1 %324  ;;  %v323_v5 = vpop.permute.xlu0 %322 }
 0x189   : > { %v327_v6 = vrot.slane %v325_v4, 4  ;;  %v326_v7 = vrot.slane %v323_v5, 4 }
 0x18b   : > { %v329_v8 = vsel %vm328_vm15, %v326_v7, %v323_v5  ;;  %v331_v9 = vsel %vm330_vm13, %v326_v7, %v327_v6 }
 0x18c   : > { %v332_v10 = vsel %vm328_vm15, %v331_v9, %v325_v4  ;;  %338 = vst.msk [vmem:[%s197_s10] sm:$0xff] %vm337_vm0, %v329_v8  ;;  %v345_v11 = vpop.permute.xlu1 %344  ;;  %v350_v12 = vpop.permute.xlu0 %349 }
 0x18d   : > { %342 = vst.msk [vmem:[%s197_s10 + $0x8] sm:$0xff] %vm341_vm1, %v332_v10 }
 0x18e   : > { %348 = vst.msk [vmem:[%s197_s10] sm:$0xf] %vm347_vm2, %v345_v11 }
 0x18f   : > { %353 = vst.msk [vmem:[%s197_s10 + $0xc] sm:$0xf] %vm352_vm3, %v350_v12 }
 0x190   : > { %355 = vst.msk [vmem:[%s197_s10 + $0xc] sm:$0xf] %vm354_vm4, %v468_v1 }
 0x191 PF: > { %s14_s15 = sadd.s32 1, %s466_s15  }
 0x192   : > { %p11_p4 = scmp.ge.s32.totalorder %s14_s15, 4  }
 0x194   :  { %13 = sbr.rel (!%p11_p4) target bundleno = 1 (0x1), region = 66 }

// kernel: conv_block_forward.6
= control target key start
LH: loop header
LB: loop body
LE: loop exit
PB: predicated region body
PF: predicated region fallthrough
CT: control target
= control target key end

     0   :  { %s968_s18 = smov 0   ;;  %s1041_s0 = inlined_call_operand.vmem [shape: bf16[2,8,512], index: 0, kind: input, shape index: {}]   ;;  %s1042_s1 = inlined_call_operand.vmem [shape: bf16[8,72], index: 1, kind: input, shape index: {}]   ;;  %s1043_s2 = inlined_call_operand.vmem [shape: s32[1,384], index: 2, kind: input, shape index: {}]   ;;  %s1044_s3 = inlined_call_operand.vmem [shape: bf16[2,8,384], index: 3, kind: output, shape index: {0}]   ;;  %s1045_s4 = inlined_call_operand.vmem [shape: f32[2,8,1], index: 4, kind: output, shape index: {1}]   ;;  %s1046_s5 = inlined_call_operand.vmem [shape: f32[2,8,1], index: 5, kind: output, shape index: {2}]  }
   0x1 LB: > { %s784_s19 = sadd.s32 4294967295, %s925_s18   ;;  %p788_p0 = scmp.ge.s32.totalorder %s925_s18, 1  ;;  %s925_s18 = sphi %s968_s18, %s16_s18  }
   0x2   : > { %p192_p1 = scmp.lt.s32.totalorder %s925_s18, 3 }
   0x4   : > { %p193_p2 = pnand %p788_p0, %p192_p1 }
   0x5   : > { %p228_p3 = scmp.lt.s32.totalorder (!%p193_p2), %s784_s19, 1  ;;  %v927_v2 = vmov (!%p193_p2), 0.0   ;;  %s928_s24 = smov (!%p193_p2), 126   ;;  %v935_v9 = vmov (!%p193_p2), 0   ;;  %vm936_vm0 = vmmov (!%p193_p2), 0   ;;  %vm273_vm1 = vcmask (!%p193_p2), 1039360  }
   0x6   : > { %196 = sbr.rel (%p193_p2) target bundleno = 536 (0x218), region = 32  ;;  %810 = vmatprep.subr.bf16.mxu1 (!%p193_p2), %v927_v2  ;;  %s929_s25 = smov (!%p193_p2), 127   ;;  %568 = vmatprep.mubr.bf16.mxu0 (!%p193_p2), %v935_v9  ;;  %vm301_vm2 = vcmask (!%p193_p2), 1031168   ;;  %vm329_vm3 = vcmask (!%p193_p2), 850944   ;;  %vm357_vm4 = vcmask (!%p193_p2), 842752   ;;  %vm385_vm5 = vcmask (!%p193_p2), 834560  }
   0x7   : > { %s930_s26 = smov (!%p193_p2), 104   ;;  %s931_s27 = smov (!%p193_p2), 102   ;;  %820 = vmatprep.mubr.msk.bf16.mxu1 (!%p193_p2), %vm936_vm0, %v927_v2  ;;  %vm413_vm6 = vcmask (!%p193_p2), 654336   ;;  %vm441_vm7 = vcmask (!%p193_p2), 646144   ;;  %vm469_vm8 = vcmask (!%p193_p2), 637952   ;;  %vm526_vm9 = vcmask (!%p193_p2), 1043456  }
   0x8   : > { %s932_s28 = smov (!%p193_p2), 103   ;;  %s933_s29 = smov (!%p193_p2), 79   ;;  %vm522_vm10 = vcmask (!%p193_p2), 588800   ;;  %vm657_vm15 = vcmask (!%p193_p2), 7168  }
   0x9   : > { %s934_s30 = smov (!%p193_p2), 80   ;;  %s937_s6 = smov (!%p193_p2), 78  }
   0xd   : > { %s1048_s19 = smov (!%p228_p3, %s784_s19), 1 }
   0xe   : > { %s801_s20 = sshll.u32 %s1048_s19, 4  ;;  %s824_s11 = smul.u32 12, %s1048_s19 }
   0xf   : > { %s982_s23 = scalar_lea.vmem %s1041_s0, %s801_s20  ;;  %s792_s15 = sshll.u32 %s1048_s19, 3 }
  0x10   : > { %v283_v0 = vld [vmem:[%s982_s23] sm:$0xff]  ;;  %v284_v1 = vld [vmem:[%s982_s23 + $0x8] sm:$0xff]  ;;  %s237_s14 = scalar_lea.vmem %s1044_s3, %s824_s11  ;;  %s241_s20 = scalar_lea.vmem %s1045_s4, %s792_s15 }
  0x11   : > { %v286_v3 = vunpack.c.h.bf16 %v283_v0  ;;  %v287_v4 = vunpack.c.l.bf16 %v284_v1  ;;  %v288_v5 = vunpack.c.h.bf16 %v284_v1  ;;  %v987_v6 = vunpack.c.l.bf16 %v283_v0  ;;  %v248_v15 = vld [vmem:[%s982_s23 + $0x8] sm:$0xf]  ;;  %s245_s23 = scalar_lea.vmem %s1046_s5, %s792_s15 }
  0x12   : > { %v251_v22 = vunpack.c.l.bf16 %v248_v15 }
  0x13   : > { %v854_v7 = vpack.i.bf16 %v287_v4, %v286_v3  ;;  %v849_v8 = vpack.i.bf16 %v288_v5, %v987_v6  ;;  %v914_v10 = vpack.i.bf16 %v286_v3, %v987_v6 }
  0x15   : > { %855 = vrot.lane.b32.xlu1 %v854_v7, %s928_s24  ;;  %845 = vrot.lane.b32.xlu0 %v854_v7, %s929_s25 }
  0x19   : > { %860 = vrot.lane.b32.xlu1 %v854_v7, %s930_s26  ;;  %850 = vrot.lane.b32.xlu0 %v849_v8, %s929_s25 }
  0x1d   : > { %870 = vrot.lane.b32.xlu1 %v849_v8, %s930_s26  ;;  %865 = vrot.lane.b32.xlu0 %v849_v8, %s928_s24 }
  0x21   : > { %880 = vrot.lane.b32.xlu1 %v854_v7, %s931_s27  ;;  %875 = vrot.lane.b32.xlu0 %v854_v7, %s932_s28 }
  0x25   : > { %890 = vrot.lane.b32.xlu1 %v849_v8, %s931_s27  ;;  %885 = vrot.lane.b32.xlu0 %v849_v8, %s932_s28 }
  0x29   : > { %900 = vrot.lane.b32.xlu1 %v854_v7, %s933_s29  ;;  %895 = vrot.lane.b32.xlu0 %v854_v7, %s934_s30 }
  0x2d   : > { %910 = vrot.lane.b32.xlu1 %v849_v8, %s933_s29  ;;  %905 = vrot.lane.b32.xlu0 %v849_v8, %s934_s30 }
  0x31   : > { %915 = vrot.lane.b32.xlu0 %v914_v10, %s937_s6  ;;  %465 = vrot.lane.b32.xlu1 %v287_v4, %s937_s6 }
  0x35   : > { %467 = vrot.lane.b32.xlu0 %v288_v5, %s937_s6 }
  0x87   : > { %v856_v11 = vpop.permute.xlu1 %855  ;;  %v846_v12 = vpop.permute.xlu0 %845 }
  0x88   : > { %v848_v13 = vunpack.i.h.bf16 %v846_v12  ;;  %v847_v14 = vunpack.i.l.bf16 %v846_v12  ;;  %v858_v16 = vunpack.i.h.bf16 %v856_v11  ;;  %v857_v17 = vunpack.i.l.bf16 %v856_v11 }
  0x8a   : > { %v275_v18 = vsel %vm273_vm1, %v847_v14, %v848_v13  ;;  %v303_v29 = vsel %vm301_vm2, %v857_v17, %v858_v16 }
  0x8b   : > { %v861_v19 = vpop.permute.xlu1 %860  ;;  %v851_v20 = vpop.permute.xlu0 %850  ;;  %v508_v21 = vpack.c.bf16 %v275_v18, %v286_v3 }
  0x8c   : > { %v863_v23 = vunpack.i.h.bf16 %v861_v19  ;;  %v862_v24 = vunpack.i.l.bf16 %v861_v19  ;;  %v853_v25 = vunpack.i.h.bf16 %v851_v20  ;;  %v852_v26 = vunpack.i.l.bf16 %v851_v20 }
  0x8d   : > { %536 = vmatprep.subr.bf16.mxu0 %v508_v21 }
  0x8e   : > { %v274_v27 = vsel %vm273_vm1, %v852_v26, %v847_v14  ;;  %v276_v28 = vsel %vm273_vm1, %v848_v13, %v853_v25  ;;  %v331_v30 = vsel %vm329_vm3, %v862_v24, %v863_v23 }
  0x8f   : > { %v871_v31 = vpop.permute.xlu1 %870  ;;  %v866_v32 = vpop.permute.xlu0 %865  ;;  %v507_v33 = vpack.c.bf16 %v274_v27, %v987_v6  ;;  %v509_v34 = vpack.c.bf16 %v276_v28, %v251_v22  ;;  %v511_v35 = vpack.c.bf16 %v331_v30, %v303_v29 }
  0x90   : > { %v873_v36 = vunpack.i.h.bf16 %v871_v31  ;;  %v872_v37 = vunpack.i.l.bf16 %v871_v31  ;;  %v868_v38 = vunpack.i.h.bf16 %v866_v32  ;;  %v867_v39 = vunpack.i.l.bf16 %v866_v32 }
  0x91   : > { %537 = vmatpush1.bf16.msra.mxu0 %v507_v33  ;;  %811 = vmatpush3.bf16.msra.mxu1 %v509_v34 }
  0x92   : > { %538 = vmatprep.subr.bf16.mxu0 %v511_v35  ;;  %812 = vmatprep.subr.bf16.mxu1 %v927_v2  ;;  %v302_v40 = vsel %vm301_vm2, %v867_v39, %v857_v17  ;;  %v330_v41 = vsel %vm329_vm3, %v872_v37, %v862_v24  ;;  %v304_v42 = vsel %vm301_vm2, %v858_v16, %v868_v38  ;;  %v479_v38 = vld [vmem:[%s1042_s1] sm:$0xf] }
  0x93   : > { %v881_v43 = vpop.permute.xlu1 %880  ;;  %v876_v44 = vpop.permute.xlu0 %875  ;;  %v510_v45 = vpack.c.bf16 %v330_v41, %v302_v40  ;;  %v332_v46 = vsel %vm329_vm3, %v863_v23, %v873_v36  ;;  %v635_v40 = vlaneseq }
  0x94   : > { %v883_v47 = vunpack.i.h.bf16 %v881_v43  ;;  %v882_v48 = vunpack.i.l.bf16 %v881_v43  ;;  %v878_v49 = vunpack.i.h.bf16 %v876_v44  ;;  %v877_v50 = vunpack.i.l.bf16 %v876_v44 }
  0x95   : > { %539 = vmatpush1.bf16.msra.mxu0 %v510_v45  ;;  %v512_v51 = vpack.c.bf16 %v332_v46, %v304_v42  ;;  %v636_v41 = vshrl.u32 %v635_v40, 7 }
  0x96   : > { %v359_v52 = vsel %vm357_vm4, %v877_v50, %v878_v49  ;;  %v387_v53 = vsel %vm385_vm5, %v882_v48, %v883_v47 }
  0x97   : > { %813 = vmatpush3.bf16.msra.mxu1 %v512_v51  ;;  %v891_v54 = vpop.permute.xlu1 %890  ;;  %v886_v55 = vpop.permute.xlu0 %885  ;;  %v514_v56 = vpack.c.bf16 %v387_v53, %v359_v52  ;;  %v637_v42 = vsub.s32 0, %v636_v41  ;;  %v641_v44 = vsub.s32 1, %v636_v41  ;;  %v645_v45 = vsub.s32 2, %v636_v41 }
  0x98   : > { %v893_v57 = vunpack.i.h.bf16 %v891_v54  ;;  %v892_v58 = vunpack.i.l.bf16 %v891_v54  ;;  %v888_v59 = vunpack.i.h.bf16 %v886_v55  ;;  %v887_v60 = vunpack.i.l.bf16 %v886_v55  ;;  %814 = vmatprep.subr.bf16.mxu1 %v927_v2 }
  0x99   : > { %540 = vmatprep.subr.bf16.mxu0 %v514_v56 }
  0x9a   : > { %v358_v61 = vsel %vm357_vm4, %v887_v60, %v877_v50  ;;  %v386_v62 = vsel %vm385_vm5, %v892_v58, %v882_v48  ;;  %v360_v63 = vsel %vm357_vm4, %v878_v49, %v888_v59  ;;  %v388_v0 = vsel %vm385_vm5, %v883_v47, %v893_v57 }
  0x9b   : > { %v901_v1 = vpop.permute.xlu1 %900  ;;  %v896_v3 = vpop.permute.xlu0 %895  ;;  %v513_v4 = vpack.c.bf16 %v386_v62, %v358_v61  ;;  %v515_v5 = vpack.c.bf16 %v388_v0, %v360_v63 }
  0x9c   : > { %v903_v6 = vunpack.i.h.bf16 %v901_v1  ;;  %v902_v7 = vunpack.i.l.bf16 %v901_v1  ;;  %v898_v8 = vunpack.i.h.bf16 %v896_v3  ;;  %v897_v10 = vunpack.i.l.bf16 %v896_v3 }
  0x9d   : > { %541 = vmatpush1.bf16.msra.mxu0 %v513_v4  ;;  %815 = vmatpush3.bf16.msra.mxu1 %v515_v5 }
  0x9e   : > { %v415_v11 = vsel %vm413_vm6, %v897_v10, %v898_v8  ;;  %v443_v12 = vsel %vm441_vm7, %v902_v7, %v903_v6  ;;  %816 = vmatprep.subr.bf16.mxu1 %v927_v2 }
  0x9f   : > { %v911_v13 = vpop.permute.xlu1 %910  ;;  %v906_v14 = vpop.permute.xlu0 %905  ;;  %v517_v15 = vpack.c.bf16 %v443_v12, %v415_v11 }
  0xa0   : > { %v913_v16 = vunpack.i.h.bf16 %v911_v13  ;;  %v912_v17 = vunpack.i.l.bf16 %v911_v13  ;;  %v908_v18 = vunpack.i.h.bf16 %v906_v14  ;;  %v907_v19 = vunpack.i.l.bf16 %v906_v14 }
  0xa1   : > { %542 = vmatprep.subr.bf16.mxu0 %v517_v15 }
  0xa2   : > { %v414_v20 = vsel %vm413_vm6, %v907_v19, %v897_v10  ;;  %v442_v21 = vsel %vm441_vm7, %v912_v17, %v902_v7  ;;  %v416_v22 = vsel %vm413_vm6, %v898_v8, %v908_v18  ;;  %v444_v23 = vsel %vm441_vm7, %v903_v6, %v913_v16 }
  0xa3   : > { %v916_v24 = vpop.permute.xlu0 %915  ;;  %v466_v25 = vpop.permute.xlu1 %465  ;;  %v516_v26 = vpack.c.bf16 %v442_v21, %v414_v20  ;;  %v518_v27 = vpack.c.bf16 %v444_v23, %v416_v22 }
  0xa4   : > { %v918_v28 = vunpack.i.h.bf16 %v916_v24  ;;  %v917_v29 = vunpack.i.l.bf16 %v916_v24 }
  0xa5   : > { %543 = vmatpush1.bf16.msra.mxu0 %v516_v26  ;;  %817 = vmatpush3.bf16.msra.mxu1 %v518_v27 }
  0xa6   : > { %v471_v30 = vsel %vm469_vm8, %v918_v28, %v466_v25  ;;  %v470_v31 = vsel %vm469_vm8, %v917_v29, %v918_v28  ;;  %818 = vmatprep.subr.bf16.mxu1 %v927_v2  ;;  %v632_v2 = vld [vmem:[%s1043_s2] sm:$0x7] }
  0xa7   : > { %v520_v32 = vpack.c.bf16 %v471_v30, %v471_v30  ;;  %v468_v33 = vpop.permute.xlu0 %467  ;;  %v519_v34 = vpack.c.bf16 %v470_v31, %v470_v31  ;;  %vm633_vm11 = vcmp.lt.s32.totalorder %v632_v2, 16 }
  0xa8   : > { %v472_v35 = vsel %vm469_vm8, %v466_v25, %v468_v33  ;;  %v634_v43 = vsel %vm633_vm11, 1, %v935_v9 }
  0xa9   : > { %v521_v36 = vpack.c.bf16 %v472_v35, %v472_v35  ;;  %794 = vmatprep.subr.msk.bf16.mxu0 %vm526_vm9, %v520_v32  ;;  %v528_v37 = vsel %vm526_vm9, %v519_v34, 0  ;;  %v638_v46 = vrot.slane %v634_v43, %v637_v42  ;;  %v642_v47 = vrot.slane %v634_v43, %v641_v44 }
  0xaa   : > { %545 = vmatpush1.bf16.msra.mxu0 %v528_v37  ;;  %v646_v48 = vrot.slane %v634_v43, %v645_v45 }
  0xab   : > { %v534_v39 = vsel %vm526_vm9, %v521_v36, 0  ;;  %vm647_vm12 = vcmp.eq.s32.totalorder %v638_v46, 1  ;;  %vm648_vm13 = vcmp.eq.s32.totalorder %v642_v47, 1 }
  0xac   : > { %819 = vmatpush3.bf16.msra.mxu1 %v534_v39  ;;  %vm649_vm14 = vcmp.eq.s32.totalorder %v646_v48, 1 }
  0xad   : > { %795 = vmatmul.mubr.msk.bf16.vlgmr.msra.gmra.mrb[0].mxu0 %vm522_vm10, %v479_v38 }
  0xaf   : > { %821 = vmatmul.mubr.msk.bf16.vlgmr.msra.gmra.mrb[0].mxu1 %vm522_vm10, %v479_v38 }
 0x180   : > { %v570_v49 = vpop.f32.mrb[0].mxu0 }
 0x181   : > { %v650_v50 = vsel %vm647_vm12, %v570_v49, 0.0  ;;  %v572_v51 = vpop.f32.mrb[1].mxu0 }
 0x182   : > { %v659_v52 = vmul.f32 %v650_v50, %v650_v50  ;;  %v802_v53 = vpack.c.bf16 %v572_v51, %v570_v49  ;;  %v651_v54 = vsel %vm648_vm13, %v572_v51, 0.0  ;;  %v574_v9 = vpop.f32.mrb[2].mxu0  ;;  %v611_v55 = vpop.f32.mrb[0].mxu1 }
 0x183   : > { %v653_v56 = vadd.f32 %v651_v54, %v650_v50  ;;  %v660_v57 = vmul.f32 %v651_v54, %v651_v54  ;;  %v803_v58 = vpack.c.bf16 %v611_v55, %v611_v55  ;;  %v652_v59 = vsel %vm649_vm14, %v611_v55, 0.0  ;;  %v575_v60 = vpop.f32.mrb[3].mxu0  ;;  %v822_v61 = vpop.f32.mrb[1].mxu1 }
 0x184   : > { %630 = vst [vmem:[%s237_s14] sm:$0xff] %v802_v53  ;;  %v661_v62 = vmul.f32 %v652_v59, %v652_v59  ;;  %v614_v63 = vpop.f32.mrb[2].mxu1 }
 0x185   : > { %631 = vst [vmem:[%s237_s14 + $0x8] sm:$0xf] %v803_v58  ;;  %v823_v0 = vpop.f32.mrb[3].mxu1  ;;  %v654_v1 = vadd.f32 %v653_v56, %v652_v59  ;;  %v662_v3 = vadd.f32 %v660_v57, %v659_v52 }
 0x187   : > { %655 = vadd.xlane.f32.xlu1 %v654_v1  ;;  %v663_v4 = vadd.f32 %v662_v3, %v661_v62 }
 0x189   : > { %664 = vadd.xlane.f32.xlu0 %v663_v4 }
 0x214   : > { %v656_v5 = vpop.xlane.xlu1 %655 }
 0x215   : > { %658 = vst.msk [vmem:[%s241_s20] sm:$0xff] %vm657_vm15, %v656_v5 }
 0x216   : > { %v665_v6 = vpop.xlane.xlu0 %664 }
 0x217   : > { %666 = vst.msk [vmem:[%s245_s23] sm:$0xff] %vm657_vm15, %v665_v6 }
 0x218 PF: > { %s16_s18 = sadd.s32 1, %s925_s18  }
 0x219   : > { %p13_p4 = scmp.ge.s32.totalorder %s16_s18, 4  }
 0x21b   :  { %15 = sbr.rel (!%p13_p4) target bundleno = 1 (0x1), region = 86 }

// kernel: conv_block_forward.4
= control target key start
LH: loop header
LB: loop body
LE: loop exit
PB: predicated region body
PF: predicated region fallthrough
CT: control target
= control target key end

     0   :  { %s921_s18 = smov 0   ;;  %s986_s0 = inlined_call_operand.vmem [shape: bf16[2,4,512], index: 0, kind: input, shape index: {}]   ;;  %s987_s1 = inlined_call_operand.vmem [shape: bf16[8,36], index: 1, kind: input, shape index: {}]   ;;  %s988_s2 = inlined_call_operand.vmem [shape: s32[1,384], index: 2, kind: input, shape index: {}]   ;;  %s989_s3 = inlined_call_operand.vmem [shape: bf16[2,8,384], index: 3, kind: output, shape index: {0}]   ;;  %s990_s4 = inlined_call_operand.vmem [shape: f32[2,8,1], index: 4, kind: output, shape index: {1}]   ;;  %s991_s5 = inlined_call_operand.vmem [shape: f32[2,8,1], index: 5, kind: output, shape index: {2}]  }
   0x1 LB: > { %s743_s19 = sadd.s32 4294967295, %s878_s18   ;;  %p747_p0 = scmp.ge.s32.totalorder %s878_s18, 1  ;;  %s878_s18 = sphi %s921_s18, %s16_s18  }
   0x2   : > { %p192_p1 = scmp.lt.s32.totalorder %s878_s18, 3 }
   0x4   : > { %p193_p2 = pnand %p747_p0, %p192_p1 }
   0x5   : > { %p228_p3 = scmp.lt.s32.totalorder (!%p193_p2), %s743_s19, 1  ;;  %s880_s24 = smov (!%p193_p2), 104   ;;  %v883_v15 = vmov (!%p193_p2), 0.0   ;;  %v889_v17 = vmov (!%p193_p2), 0   ;;  %vm890_vm0 = vmmov (!%p193_p2), 0   ;;  %vm321_vm1 = vcmask (!%p193_p2), 850944  }
   0x6   : > { %196 = sbr.rel (%p193_p2) target bundleno = 546 (0x222), region = 32  ;;  %s881_s25 = smov (!%p193_p2), 127   ;;  %767 = vmatprep.subr.bf16.mxu1 (!%p193_p2), %v883_v15  ;;  %527 = vmatprep.mubr.bf16.mxu0 (!%p193_p2), %v889_v17  ;;  %vm271_vm2 = vcmask (!%p193_p2), 1039360   ;;  %vm296_vm3 = vcmask (!%p193_p2), 1031168   ;;  %vm346_vm4 = vcmask (!%p193_p2), 842752   ;;  %vm371_vm5 = vcmask (!%p193_p2), 834560  }
   0x7   : > { %s882_s26 = smov (!%p193_p2), 126   ;;  %s884_s27 = smov (!%p193_p2), 103   ;;  %773 = vmatprep.mubr.msk.bf16.mxu1 (!%p193_p2), %vm890_vm0, %v883_v15  ;;  %vm396_vm6 = vcmask (!%p193_p2), 654336   ;;  %vm421_vm7 = vcmask (!%p193_p2), 646144   ;;  %vm446_vm8 = vcmask (!%p193_p2), 637952   ;;  %vm485_vm9 = vcmask (!%p193_p2), 1041408  }
   0x8   : > { %s885_s28 = smov (!%p193_p2), 102   ;;  %s886_s29 = smov (!%p193_p2), 80   ;;  %vm481_vm10 = vcmask (!%p193_p2), 293888   ;;  %vm616_vm15 = vcmask (!%p193_p2), 7168  }
   0x9   : > { %s887_s30 = smov (!%p193_p2), 79   ;;  %s888_s6 = smov (!%p193_p2), 78  }
   0xd   : > { %s993_s19 = smov (!%p228_p3, %s743_s19), 1 }
   0xe   : > { %s932_s20 = sshll.u32 %s993_s19, 3  ;;  %s777_s11 = smul.u32 12, %s993_s19 }
   0xf   : > { %s232_s23 = scalar_lea.vmem %s986_s0, %s932_s20  ;;  %s241_s17 = scalar_lea.vmem %s990_s4, %s932_s20 }
  0x10   : > { %v306_v0 = vld [vmem:[%s232_s23] sm:$0xff]  ;;  %s237_s14 = scalar_lea.vmem %s989_s3, %s777_s11  ;;  %s245_s22 = scalar_lea.vmem %s991_s5, %s932_s20 }
  0x11   : > { %v247_v1 = vld [vmem:[%s232_s23] sm:$0x3f]  ;;  %v307_v2 = vunpack.c.l.bf16 %v306_v0  ;;  %v308_v3 = vunpack.c.h.bf16 %v306_v0 }
  0x12   : > { %v248_v4 = vunpack.c.l.bf16 %v247_v1  ;;  %v249_v5 = vunpack.c.h.bf16 %v247_v1 }
  0x13   : > { %v312_v6 = vcombine.low %v308_v3, %v308_v3  ;;  %v311_v7 = vcombine.low %v307_v2, %v307_v2  ;;  %v286_v8 = vcombine.high %v307_v2, %v307_v2  ;;  %v287_v12 = vcombine.high %v308_v3, %v308_v3 }
  0x14   : > { %253 = vst [vmem:[#allocation2] sm:$0xf] %v248_v4  ;;  %255 = vst [vmem:[#allocation2 + $0x10] sm:$0xf] %v249_v5  ;;  %v251_v13 = vcombine.high %v248_v4, %v248_v4 }
  0x15   : > { %v807_v9 = vpack.i.bf16 %v312_v6, %v307_v2  ;;  %v802_v10 = vpack.i.bf16 %v308_v3, %v286_v8  ;;  %v812_v11 = vpack.i.bf16 %v308_v3, %v311_v7  ;;  %v817_v14 = vpack.i.bf16 %v287_v12, %v307_v2 }
  0x16   : > { %254 = vst [vmem:[#allocation2 + $0x8] sm:$0xf] %v251_v13  ;;  %v867_v16 = vpack.i.bf16 %v286_v8, %v307_v2 }
  0x17   : > { %808 = vrot.lane.b32.xlu1 %v807_v9, %s880_s24  ;;  %798 = vrot.lane.b32.xlu0 %v807_v9, %s881_s25 }
  0x1b   : > { %803 = vrot.lane.b32.xlu0 %v802_v10, %s882_s26  ;;  %813 = vrot.lane.b32.xlu1 %v812_v11, %s881_s25 }
  0x1f   : > { %818 = vrot.lane.b32.xlu0 %v817_v14, %s882_s26  ;;  %823 = vrot.lane.b32.xlu1 %v812_v11, %s880_s24 }
  0x23   : > { %828 = vrot.lane.b32.xlu0 %v802_v10, %s884_s27  ;;  %833 = vrot.lane.b32.xlu1 %v807_v9, %s885_s28 }
  0x27   : > { %838 = vrot.lane.b32.xlu0 %v802_v10, %s886_s29  ;;  %843 = vrot.lane.b32.xlu1 %v807_v9, %s887_s30 }
  0x2b   : > { %848 = vrot.lane.b32.xlu0 %v817_v14, %s884_s27  ;;  %853 = vrot.lane.b32.xlu1 %v812_v11, %s885_s28 }
  0x2f   : > { %858 = vrot.lane.b32.xlu0 %v817_v14, %s886_s29  ;;  %863 = vrot.lane.b32.xlu1 %v812_v11, %s887_s30 }
  0x33   : > { %868 = vrot.lane.b32.xlu0 %v867_v16, %s888_s6  ;;  %442 = vrot.lane.b32.xlu1 %v308_v3, %s888_s6 }
  0x37   : > { %444 = vrot.lane.b32.xlu0 %v287_v12, %s888_s6 }
  0x89   : > { %v809_v18 = vpop.permute.xlu1 %808  ;;  %v799_v19 = vpop.permute.xlu0 %798 }
  0x8a   : > { %v811_v20 = vunpack.i.h.bf16 %v809_v18  ;;  %v810_v21 = vunpack.i.l.bf16 %v809_v18  ;;  %v801_v22 = vunpack.i.h.bf16 %v799_v19  ;;  %v800_v23 = vunpack.i.l.bf16 %v799_v19 }
  0x8c   : > { %v323_v24 = vsel %vm321_vm1, %v810_v21, %v811_v20  ;;  %v273_v25 = vsel %vm271_vm2, %v800_v23, %v801_v22 }
  0x8d   : > { %329 = vst [vmem:[#allocation2 + $0x20] sm:$0xf0] %v323_v24  ;;  %279 = vst [vmem:[#allocation2 + $0x8] sm:$0xf0] %v273_v25  ;;  %v804_v26 = vpop.permute.xlu0 %803  ;;  %v814_v27 = vpop.permute.xlu1 %813 }
  0x8e   : > { %v806_v28 = vunpack.i.h.bf16 %v804_v26  ;;  %v805_v29 = vunpack.i.l.bf16 %v804_v26  ;;  %v816_v30 = vunpack.i.h.bf16 %v814_v27  ;;  %v815_v31 = vunpack.i.l.bf16 %v814_v27 }
  0x90   : > { %v298_v32 = vsel %vm296_vm3, %v805_v29, %v806_v28  ;;  %v274_v33 = vsel %vm271_vm2, %v801_v22, %v816_v30  ;;  %v272_v34 = vsel %vm271_vm2, %v815_v31, %v800_v23 }
  0x91   : > { %304 = vst [vmem:[#allocation2 + $0x20] sm:$0xf] %v298_v32  ;;  %280 = vst [vmem:[#allocation2 + $0x10] sm:$0xf0] %v274_v33  ;;  %v819_v35 = vpop.permute.xlu0 %818  ;;  %v824_v36 = vpop.permute.xlu1 %823 }
  0x92   : > { %278 = vst [vmem:[#allocation2] sm:$0xf0] %v272_v34  ;;  %v821_v37 = vunpack.i.h.bf16 %v819_v35  ;;  %v820_v38 = vunpack.i.l.bf16 %v819_v35  ;;  %v826_v39 = vunpack.i.h.bf16 %v824_v36  ;;  %v825_v40 = vunpack.i.l.bf16 %v824_v36 }
  0x94   : > { %v297_v41 = vsel %vm296_vm3, %v820_v38, %v805_v29  ;;  %v299_v42 = vsel %vm296_vm3, %v806_v28, %v821_v37  ;;  %v324_v43 = vsel %vm321_vm1, %v811_v20, %v826_v39  ;;  %v322_v44 = vsel %vm321_vm1, %v825_v40, %v810_v21  ;;  %v458_v53 = vld [vmem:[#allocation2 + $0x8] sm:$0xff] }
  0x95   : > { %303 = vst [vmem:[#allocation2 + $0x18] sm:$0xf] %v297_v41  ;;  %305 = vst [vmem:[#allocation2 + $0x28] sm:$0xf] %v299_v42  ;;  %v829_v45 = vpop.permute.xlu0 %828  ;;  %v834_v46 = vpop.permute.xlu1 %833 }
  0x96   : > { %330 = vst [vmem:[#allocation2 + $0x28] sm:$0xf0] %v324_v43  ;;  %328 = vst [vmem:[#allocation2 + $0x18] sm:$0xf0] %v322_v44  ;;  %v831_v47 = vunpack.i.h.bf16 %v829_v45  ;;  %v830_v48 = vunpack.i.l.bf16 %v829_v45  ;;  %v836_v49 = vunpack.i.h.bf16 %v834_v46  ;;  %v835_v50 = vunpack.i.l.bf16 %v834_v46 }
  0x98   : > { %v348_v51 = vsel %vm346_vm4, %v830_v48, %v831_v47  ;;  %v373_v52 = vsel %vm371_vm5, %v835_v50, %v836_v49  ;;  %v461_v54 = vld [vmem:[#allocation2 + $0x20] sm:$0xff]  ;;  %v459_v2 = vld [vmem:[#allocation2 + $0x10] sm:$0xff] }
  0x99   : > { %354 = vst [vmem:[#allocation2 + $0x38] sm:$0xf] %v348_v51  ;;  %379 = vst [vmem:[#allocation2 + $0x38] sm:$0xf0] %v373_v52  ;;  %v839_v55 = vpop.permute.xlu0 %838  ;;  %v844_v56 = vpop.permute.xlu1 %843  ;;  %v473_v57 = vpack.c.bf16 %v461_v54, %v458_v53  ;;  %v457_v62 = vld [vmem:[#allocation2] sm:$0xff]  ;;  %v594_v54 = vlaneseq }
  0x9a   : > { %v841_v58 = vunpack.i.h.bf16 %v839_v55  ;;  %v840_v59 = vunpack.i.l.bf16 %v839_v55  ;;  %v846_v60 = vunpack.i.h.bf16 %v844_v56  ;;  %v845_v61 = vunpack.i.l.bf16 %v844_v56  ;;  %v456_v52 = vld [vmem:[%s987_s1] sm:$0xf] }
  0x9b   : > { %495 = vmatprep.subr.bf16.mxu0 %v473_v57  ;;  %v595_v55 = vshrl.u32 %v594_v54, 7 }
  0x9c   : > { %v398_v63 = vsel %vm396_vm6, %v840_v59, %v841_v58  ;;  %v423_v0 = vsel %vm421_vm7, %v845_v61, %v846_v60 }
  0x9d   : > { %v460_v1 = vld [vmem:[#allocation2 + $0x18] sm:$0xff]  ;;  %v462_v3 = vld [vmem:[#allocation2 + $0x28] sm:$0xff]  ;;  %404 = vst [vmem:[#allocation2 + $0x50] sm:$0xf] %v398_v63  ;;  %429 = vst [vmem:[#allocation2 + $0x50] sm:$0xf0] %v423_v0  ;;  %v849_v4 = vpop.permute.xlu0 %848  ;;  %v854_v5 = vpop.permute.xlu1 %853 }
  0x9e   : > { %v472_v6 = vpack.c.bf16 %v460_v1, %v457_v62  ;;  %v474_v7 = vpack.c.bf16 %v462_v3, %v459_v2  ;;  %v851_v8 = vunpack.i.h.bf16 %v849_v4  ;;  %v850_v9 = vunpack.i.l.bf16 %v849_v4 }
  0x9f   : > { %v856_v10 = vunpack.i.h.bf16 %v854_v5  ;;  %v855_v11 = vunpack.i.l.bf16 %v854_v5  ;;  %v596_v56 = vsub.s32 0, %v595_v55 }
  0xa0   : > { %496 = vmatpush1.bf16.msra.mxu0 %v472_v6  ;;  %768 = vmatpush3.bf16.msra.mxu1 %v474_v7  ;;  %v347_v12 = vsel %vm346_vm4, %v850_v9, %v830_v48  ;;  %v349_v13 = vsel %vm346_vm4, %v831_v47, %v851_v8  ;;  %v464_v28 = vld [vmem:[#allocation2 + $0x38] sm:$0xff] }
  0xa1   : > { %v372_v14 = vsel %vm371_vm5, %v855_v11, %v835_v50  ;;  %v374_v16 = vsel %vm371_vm5, %v836_v49, %v856_v10  ;;  %769 = vmatprep.subr.bf16.mxu1 %v883_v15  ;;  %353 = vst [vmem:[#allocation2 + $0x30] sm:$0xf] %v347_v12  ;;  %355 = vst [vmem:[#allocation2 + $0x40] sm:$0xf] %v349_v13  ;;  %v859_v18 = vpop.permute.xlu0 %858  ;;  %v864_v19 = vpop.permute.xlu1 %863 }
  0xa2   : > { %378 = vst [vmem:[#allocation2 + $0x30] sm:$0xf0] %v372_v14  ;;  %380 = vst [vmem:[#allocation2 + $0x40] sm:$0xf0] %v374_v16  ;;  %v861_v20 = vunpack.i.h.bf16 %v859_v18  ;;  %v860_v21 = vunpack.i.l.bf16 %v859_v18  ;;  %v866_v22 = vunpack.i.h.bf16 %v864_v19  ;;  %v865_v23 = vunpack.i.l.bf16 %v864_v19 }
  0xa4   : > { %v397_v24 = vsel %vm396_vm6, %v860_v21, %v840_v59  ;;  %v399_v25 = vsel %vm396_vm6, %v841_v58, %v861_v20  ;;  %v422_v26 = vsel %vm421_vm7, %v865_v23, %v845_v61  ;;  %v424_v27 = vsel %vm421_vm7, %v846_v60, %v866_v22  ;;  %v467_v29 = vld [vmem:[#allocation2 + $0x50] sm:$0xff] }
  0xa5   : > { %403 = vst [vmem:[#allocation2 + $0x48] sm:$0xf] %v397_v24  ;;  %405 = vst [vmem:[#allocation2 + $0x58] sm:$0xf] %v399_v25  ;;  %v869_v30 = vpop.permute.xlu0 %868  ;;  %v443_v31 = vpop.permute.xlu1 %442  ;;  %v476_v32 = vpack.c.bf16 %v467_v29, %v464_v28  ;;  %v600_v58 = vsub.s32 1, %v595_v55  ;;  %v604_v59 = vsub.s32 2, %v595_v55 }
  0xa6   : > { %428 = vst [vmem:[#allocation2 + $0x48] sm:$0xf0] %v422_v26  ;;  %430 = vst [vmem:[#allocation2 + $0x58] sm:$0xf0] %v424_v27  ;;  %v871_v33 = vunpack.i.h.bf16 %v869_v30  ;;  %v870_v34 = vunpack.i.l.bf16 %v869_v30 }
  0xa7   : > { %497 = vmatprep.subr.bf16.mxu0 %v476_v32 }
  0xa8   : > { %v447_v35 = vsel %vm446_vm8, %v870_v34, %v871_v33  ;;  %v448_v36 = vsel %vm446_vm8, %v871_v33, %v443_v31 }
  0xa9   : > { %453 = vst [vmem:[#allocation2 + $0x60] sm:$0xf] %v447_v35  ;;  %454 = vst [vmem:[#allocation2 + $0x68] sm:$0xf] %v448_v36  ;;  %v445_v37 = vpop.permute.xlu0 %444  ;;  %v463_v39 = vld [vmem:[#allocation2 + $0x30] sm:$0xff]  ;;  %v465_v41 = vld [vmem:[#allocation2 + $0x40] sm:$0xff] }
  0xaa   : > { %v449_v38 = vsel %vm446_vm8, %v443_v31, %v445_v37 }
  0xab   : > { %455 = vst [vmem:[#allocation2 + $0x70] sm:$0xf] %v449_v38 }
  0xad   : > { %v466_v40 = vld [vmem:[#allocation2 + $0x48] sm:$0xff]  ;;  %v468_v42 = vld [vmem:[#allocation2 + $0x58] sm:$0xff] }
  0xae   : > { %v475_v43 = vpack.c.bf16 %v466_v40, %v463_v39  ;;  %v477_v44 = vpack.c.bf16 %v468_v42, %v465_v41 }
  0xb0   : > { %498 = vmatpush1.bf16.msra.mxu0 %v475_v43  ;;  %770 = vmatpush3.bf16.msra.mxu1 %v477_v44  ;;  %v470_v45 = vld [vmem:[#allocation2 + $0x68] sm:$0xf]  ;;  %v469_v46 = vld [vmem:[#allocation2 + $0x60] sm:$0xf] }
  0xb1   : > { %771 = vmatprep.subr.bf16.mxu1 %v883_v15  ;;  %v479_v47 = vpack.c.bf16 %v470_v45, %v470_v45  ;;  %v478_v48 = vpack.c.bf16 %v469_v46, %v469_v46  ;;  %v591_v15 = vld [vmem:[%s988_s2] sm:$0x7] }
  0xb2   : > { %v471_v49 = vld [vmem:[#allocation2 + $0x70] sm:$0xf]  ;;  %vm592_vm11 = vcmp.lt.s32.totalorder %v591_v15, 16 }
  0xb3   : > { %753 = vmatprep.subr.msk.bf16.mxu0 %vm485_vm9, %v479_v47  ;;  %v487_v50 = vsel %vm485_vm9, %v478_v48, 0  ;;  %v480_v51 = vpack.c.bf16 %v471_v49, %v471_v49  ;;  %v593_v57 = vsel %vm592_vm11, 1, %v889_v17 }
  0xb4   : > { %500 = vmatpush1.bf16.msra.mxu0 %v487_v50  ;;  %v597_v60 = vrot.slane %v593_v57, %v596_v56  ;;  %v601_v61 = vrot.slane %v593_v57, %v600_v58  ;;  %v605_v62 = vrot.slane %v593_v57, %v604_v59 }
  0xb5   : > { %v493_v53 = vsel %vm485_vm9, %v480_v51, 0 }
  0xb6   : > { %772 = vmatpush3.bf16.msra.mxu1 %v493_v53  ;;  %vm606_vm12 = vcmp.eq.s32.totalorder %v597_v60, 1  ;;  %vm607_vm13 = vcmp.eq.s32.totalorder %v601_v61, 1  ;;  %vm608_vm14 = vcmp.eq.s32.totalorder %v605_v62, 1 }
  0xb7   : > { %754 = vmatmul.mubr.msk.bf16.vlgmr.msra.gmra.mrb[0].mxu0 %vm481_vm10, %v456_v52 }
  0xb9   : > { %774 = vmatmul.mubr.msk.bf16.vlgmr.msra.gmra.mrb[0].mxu1 %vm481_vm10, %v456_v52 }
 0x18a   : > { %v529_v63 = vpop.f32.mrb[0].mxu0 }
 0x18b   : > { %v609_v0 = vsel %vm606_vm12, %v529_v63, 0.0  ;;  %v531_v1 = vpop.f32.mrb[1].mxu0 }
 0x18c   : > { %v618_v2 = vmul.f32 %v609_v0, %v609_v0  ;;  %v761_v3 = vpack.c.bf16 %v531_v1, %v529_v63  ;;  %v610_v4 = vsel %vm607_vm13, %v531_v1, 0.0  ;;  %v533_v17 = vpop.f32.mrb[2].mxu0  ;;  %v570_v5 = vpop.f32.mrb[0].mxu1 }
 0x18d   : > { %v612_v6 = vadd.f32 %v610_v4, %v609_v0  ;;  %v619_v7 = vmul.f32 %v610_v4, %v610_v4  ;;  %v762_v8 = vpack.c.bf16 %v570_v5, %v570_v5  ;;  %v611_v9 = vsel %vm608_vm14, %v570_v5, 0.0  ;;  %v534_v10 = vpop.f32.mrb[3].mxu0  ;;  %v775_v11 = vpop.f32.mrb[1].mxu1 }
 0x18e   : > { %589 = vst [vmem:[%s237_s14] sm:$0xff] %v761_v3  ;;  %v620_v12 = vmul.f32 %v611_v9, %v611_v9  ;;  %v573_v13 = vpop.f32.mrb[2].mxu1 }
 0x18f   : > { %590 = vst [vmem:[%s237_s14 + $0x8] sm:$0xf] %v762_v8  ;;  %v776_v14 = vpop.f32.mrb[3].mxu1  ;;  %v613_v16 = vadd.f32 %v612_v6, %v611_v9  ;;  %v621_v18 = vadd.f32 %v619_v7, %v618_v2 }
 0x191   : > { %614 = vadd.xlane.f32.xlu1 %v613_v16  ;;  %v622_v19 = vadd.f32 %v621_v18, %v620_v12 }
 0x193   : > { %623 = vadd.xlane.f32.xlu0 %v622_v19 }
 0x21e   : > { %v615_v20 = vpop.xlane.xlu1 %614 }
 0x21f   : > { %617 = vst.msk [vmem:[%s241_s17] sm:$0xff] %vm616_vm15, %v615_v20 }
 0x220   : > { %v624_v21 = vpop.xlane.xlu0 %623 }
 0x221   : > { %625 = vst.msk [vmem:[%s245_s22] sm:$0xff] %vm616_vm15, %v624_v21 }
 0x222 PF: > { %s16_s18 = sadd.s32 1, %s878_s18  }
 0x223   : > { %p13_p4 = scmp.ge.s32.totalorder %s16_s18, 4  }
 0x225   :  { %15 = sbr.rel (!%p13_p4) target bundleno = 1 (0x1), region = 86 }

// kernel: conv_block_forward.7
= control target key start
LH: loop header
LB: loop body
LE: loop exit
PB: predicated region body
PF: predicated region fallthrough
CT: control target
= control target key end

     0   :  { %8 = vsyncpa [#allocation3], 0  ;;  %s2138_s0 = inlined_call_operand.vmem [shape: bf16[2,8,384], index: 0, kind: input, shape index: {}]   ;;  %s2139_s1 = inlined_call_operand.vmem [shape: f32[8,1], index: 1, kind: input, shape index: {}]   ;;  %s2140_s2 = inlined_call_operand.vmem [shape: f32[8,1], index: 2, kind: input, shape index: {}]   ;;  %s2141_s3 = inlined_call_operand.hbm [shape: f32[2,8,16,16], index: 3, kind: output, shape index: {}]  }
   0x1   :  { %10 = vsyncpa [#allocation3 + $0x1], 0  ;;  %s1330_s12 = smov 0   ;;  %s1332_s13 = smov 0  }
   0x2   :  { %s1334_s14 = smov 0   ;;  %s1336_s15 = smov 0  }
   0x3 LB: > { %s1351_s16 = sadd.s32 4294967295, %s1289_s15   ;;  %s1156_s17 = sadd.s32 4294967294, %s1289_s15   ;;  %s1289_s15 = sphi %s1336_s15, %s2147_s15   ;;  %s1285_s14 = sphi %s1334_s14, %s2146_s14   ;;  %s1281_s13 = sphi %s1332_s13, %s2145_s13   ;;  %s1277_s12 = sphi %s1330_s12, %s2144_s12  }
   0x4   : > { %s1355_s18 = sadd.s32 1, %s1289_s15   ;;  %s91_s19 = sadd.s32 1, %s1285_s14 }
   0x5   : > { %s88_s20 = ssub.s32 %s1289_s15, %s1355_s18  ;;  %p101_p0 = scmp.ne.s32.totalorder %s1285_s14, %s1281_s13 }
   0x6   : > { %p89_p1 = scmp.eq.s32.totalorder %s88_s20, 0  ;;  %p102_p2 = scmp.eq.s32.totalorder %s1351_s16, 1 }
   0x7   : > { %p107_p3 = scmp.ne.s32.totalorder %s1281_s13, %s1277_s12  ;;  %p108_p4 = scmp.eq.s32.totalorder %s1156_s17, 1 }
   0x8   : > { %s1366_s21 = scalar_select %p89_p1, %s1285_s14, %s91_s19  }
   0x9   : > { %p1368_p5 = por %p102_p2, %p101_p0  ;;  %p1372_p6 = por %p108_p4, %p107_p3 }
   0xa   : > { %p1159_p7 = scmp.ge.s32.totalorder %s1289_s15, 1  ;;  %p140_p8 = scmp.lt.s32.totalorder %s1289_s15, 3 }
   0xc   : > { %p141_p9 = pnand %p1159_p7, %p140_p8 }
   0xd   : > { %v174_v0 = vld [vmem:[%s2139_s1] sm:$0xff] (!%p141_p9)  ;;  %v1291_v1 = vmov (!%p141_p9), 0   ;;  %p164_p10 = scmp.lt.s32.totalorder (!%p141_p9), %s1351_s16, 1  ;;  %v1292_v9 = vmov (!%p141_p9), 1966171168   ;;  %v203_v11 = vlaneseq (!%p141_p9)  ;;  %s161_s6 = sand.u32 (!%p141_p9), 1, %s1281_s13  }
   0xe   : > { %144 = sbr.rel (%p141_p9) target bundleno = 546 (0x222), region = 32  ;;  %1226 = vset.pattern.permute.xlu0 (!%p141_p9), %v1291_v1  ;;  %v183_v2 = vld [vmem:[%s2140_s2] sm:$0xff] (!%p141_p9)  ;;  %v201_v10 = vunpack.c.l.s4 (!%p141_p9), %v1292_v9  ;;  %s1160_s7 = sshll.u32 (!%p141_p9), %s161_s6, 7  ;;  %vm256_vm0 = vcmask (!%p141_p9), 122880   ;;  %vm572_vm1 = vcmask (!%p141_p9), 64512  }
   0xf   : > { %177 = vperm.xlu0 (!%p141_p9), %1226, %v174_v0   ;;  %v1389_v16 = vshrl.u32 (!%p141_p9), %v203_v11, 7  ;;  %s1418_s8 = scalar_lea.vmem (!%p141_p9), [#allocation2], %s1160_s7  ;;  %s1293_s9 = smov (!%p141_p9), 80  }
  0x10   : > { %v202_v15 = vunpack.c.0.s8 (!%p141_p9), %v201_v10  ;;  %s1294_s10 = smov (!%p141_p9), 104   ;;  %s1295_s11 = smov (!%p141_p9), 56  }
  0x11   : > { %v1398_v30 = vsub.s32 (!%p141_p9), 0, %v1389_v16  ;;  %v1473_v62 = vsub.s32 (!%p141_p9), 1, %v1389_v16  ;;  %s1296_s17 = smov (!%p141_p9), 32   ;;  %s1297_s19 = smov (!%p141_p9), 112  }
  0x12   : > { %v1393_v24 = vsub.s32 (!%p141_p9), %v202_v15, %v1389_v16  ;;  %s1298_s20 = smov (!%p141_p9), 88   ;;  %s1299_s24 = smov (!%p141_p9), 64  }
  0x13   : > { %186 = vperm.xlu0 (!%p141_p9), %1226, %v183_v2   ;;  %s1300_s25 = smov (!%p141_p9), 8   ;;  %s1301_s26 = smov (!%p141_p9), 40  }
  0x14   : > { %s1302_s27 = smov (!%p141_p9), 16   ;;  %s1305_s30 = smov (!%p141_p9), 72  }
  0x15   : > { %s165_s28 = scalar_select %p164_p10, %s1351_s16, 1 }
  0x16   : > { %s1306_s4 = smov 48   ;;  %s1167_s7 = sshll.u32 %s1351_s16, 11 }
  0x17   : > { %s1168_s29 = smul.u32 12, %s165_s28  ;;  %s1303_s28 = smov 120  }
  0x19   : > { %s168_s5 = scalar_lea.vmem %s2138_s0, %s1168_s29  ;;  %s1304_s29 = smov 96  }
  0x1a   : > { %v169_v3 = vld [vmem:[%s168_s5] sm:$0xff]  ;;  %v170_v4 = vld [vmem:[%s168_s5 + $0x8] sm:$0xf]  ;;  %s1307_s5 = smov 24  }
  0x1b   : > { %v171_v5 = vunpack.c.l.bf16 %v169_v3  ;;  %v172_v6 = vunpack.c.h.bf16 %v169_v3  ;;  %v173_v7 = vunpack.c.l.bf16 %v170_v4 }
  0x8e   : > { %v178_v8 = vpop.permute.xlu0 %177 }
  0x8f   : > { %v180_v12 = vmul.f32 %v178_v8, %v171_v5  ;;  %v181_v13 = vmul.f32 %v178_v8, %v172_v6  ;;  %v182_v14 = vmul.f32 %v178_v8, %v173_v7 }
  0x92   : > { %v187_v17 = vpop.permute.xlu0 %186 }
  0x93   : > { %v189_v18 = vadd.f32 %v187_v17, %v180_v12  ;;  %v190_v19 = vadd.f32 %v187_v17, %v181_v13  ;;  %v191_v20 = vadd.f32 %v187_v17, %v182_v14 }
  0x95   : > { %v192_v21 = vmul.f32 0.01, %v189_v18  ;;  %v193_v22 = vmul.f32 0.01, %v190_v19  ;;  %v194_v23 = vmul.f32 0.01, %v191_v20 }
  0x97   : > { %v195_v25 = vmax.f32 %v189_v18, %v192_v21  ;;  %v196_v26 = vmax.f32 %v190_v19, %v193_v22  ;;  %v197_v27 = vmax.f32 %v191_v20, %v194_v23 }
  0x99   : > { %v199_v28 = vcombine.high %v195_v25, %v195_v25  ;;  %v839_v29 = vcombine.high %v197_v27, %v197_v27  ;;  %v846_v31 = vrot.slane %v197_v27, %v1393_v24  ;;  %v206_v32 = vrot.slane %v195_v25, %v1393_v24 }
  0x9a   : > { %v426_v34 = vcombine.low %v195_v25, %v196_v26  ;;  %v427_v41 = vcombine.high %v195_v25, %v196_v26  ;;  %v597_v45 = vcombine.high %v196_v26, %v196_v26  ;;  %v1436_v50 = vrot.slane %v196_v26, %v1393_v24 }
  0x9b   : > { %v1403_v33 = vrot.slane %v839_v29, %v1393_v24  ;;  %v213_v35 = vrot.slane %v199_v28, %v1393_v24  ;;  %v854_v36 = vcombine.high %v846_v31, %v846_v31  ;;  %v1407_v37 = vrot.slane %v846_v31, %v1393_v24 }
  0x9c   : > { %v222_v38 = vrot.slane %v206_v32, %v1393_v24  ;;  %v214_v39 = vcombine.high %v206_v32, %v206_v32  ;;  %v434_v47 = vrot.slane %v426_v34, %v1393_v24  ;;  %v1439_v51 = vrot.slane %v427_v41, %v1393_v24 }
  0x9d   : > { %v1412_v40 = vrot.slane %v1403_v33, %v1393_v24  ;;  %v1415_v42 = vrot.slane %v854_v36, %v1393_v24  ;;  %v1431_v48 = vrot.slane %v213_v35, %v1393_v24  ;;  %v215_v53 = vcombine.high %v213_v35, %v213_v35 }
  0x9e   : > { %v268_v43 = vrot.slane %v222_v38, %v1398_v30  ;;  %257 = vst.msk [vmem:[%s1418_s8] sm:$0x1] %vm256_vm0, %v222_v38  ;;  %v236_v44 = vrot.slane %v214_v39, %v1393_v24  ;;  %v1423_v46 = vcombine.high %v222_v38, %v222_v38  ;;  %v611_v54 = vrot.slane %v597_v45, %v1393_v24 }
  0x9f   : > { %261 = vst.msk [vmem:[%s1418_s8 + $0x40] sm:$0x1] %vm256_vm0, %v1431_v48  ;;  %v1455_v55 = vrot.slane %v215_v53, %v1393_v24  ;;  %v442_v56 = vcombine.high %v434_v47, %v434_v47  ;;  %v1459_v57 = vrot.slane %v1436_v50, %v1393_v24  ;;  %v443_v59 = vcombine.high %v1439_v51, %v1439_v51 }
  0xa0   : > { %329 = vrot.lane.b32.xlu0 %v268_v43, %s1293_s9  ;;  %297 = vrot.lane.b32.xlu1 %v268_v43, %s1294_s10  ;;  %258 = vst.msk [vmem:[%s1418_s8 + $0x10] sm:$0x1] %vm256_vm0, %v236_v44  ;;  %v1433_v49 = vcombine.high %v236_v44, %v236_v44  ;;  %259 = vst.msk [vmem:[%s1418_s8 + $0x20] sm:$0x1] %vm256_vm0, %v1423_v46  ;;  %v272_v52 = vrot.slane %v236_v44, %v1398_v30 }
  0xa1   : > { %v627_v58 = vrot.slane %v611_v54, %v1393_v24  ;;  %262 = vst.msk [vmem:[%s1418_s8 + $0x50] sm:$0x1] %vm256_vm0, %v1455_v55  ;;  %v1468_v60 = vrot.slane %v442_v56, %v1393_v24  ;;  %v245_v61 = vcombine.high %v1431_v48, %v1431_v48  ;;  %v1479_v0 = vrot.slane %v443_v59, %v1393_v24 }
  0xa2   : > { %260 = vst.msk [vmem:[%s1418_s8 + $0x30] sm:$0x1] %vm256_vm0, %v1433_v49  ;;  %v855_v1 = vcombine.high %v1403_v33, %v1403_v33  ;;  %v613_v3 = vcombine.high %v611_v54, %v611_v54  ;;  %v884_v4 = vcombine.high %v1407_v37, %v1407_v37  ;;  %v1494_v5 = vrot.slane %v1459_v57, %v1398_v30 }
  0xa3   : > { %v1476_v63 = vrot.slane %v627_v58, %v1398_v30  ;;  %v1486_v2 = vrot.slane %v245_v61, %v1398_v30  ;;  %263 = vst.msk [vmem:[%s1418_s8 + $0x60] sm:$0x1] %vm256_vm0, %v245_v61  ;;  %v523_v6 = vrot.slane %v1479_v0, %v1473_v62  ;;  %v487_v7 = vrot.slane %v1468_v60, %v1398_v30 }
  0xa4   : > { %361 = vrot.lane.b32.xlu0 %v268_v43, %s1295_s11  ;;  %299 = vrot.lane.b32.xlu1 %v272_v52, %s1294_s10  ;;  %v1501_v8 = vrot.slane %v434_v47, %v1393_v24  ;;  %v641_v9 = vrot.slane %v613_v3, %v1393_v24  ;;  %v519_v10 = vrot.slane %v1479_v0, %v1398_v30 }
  0xa5   : > { %v247_v11 = vcombine.high %v1455_v55, %v1455_v55  ;;  %v643_v12 = vcombine.high %v627_v58, %v627_v58  ;;  %v1510_v13 = vcombine.high %v1468_v60, %v1468_v60  ;;  %v1514_v14 = vcombine.high %v1479_v0, %v1479_v0 }
  0xa6   : > { %v1518_v15 = vrot.slane %v1407_v37, %v1398_v30  ;;  %v1524_v16 = vrot.slane %v641_v9, %v1398_v30  ;;  %v645_v18 = vcombine.high %v641_v9, %v641_v9  ;;  %v1546_v26 = vrot.slane %v884_v4, %v1398_v30 }
  0xa7   : > { %v1527_v17 = vrot.slane %v247_v11, %v1398_v30  ;;  %264 = vst.msk [vmem:[%s1418_s8 + $0x70] sm:$0x1] %vm256_vm0, %v247_v11  ;;  %v1532_v19 = vrot.slane %v643_v12, %v1398_v30  ;;  %v507_v20 = vrot.slane %v1510_v13, %v1473_v62  ;;  %v503_v21 = vrot.slane %v1510_v13, %v1398_v30 }
  0xa8   : > { %393 = vrot.lane.b32.xlu0 %v268_v43, %s1296_s17  ;;  %331 = vrot.lane.b32.xlu1 %v272_v52, %s1293_s9  ;;  %v539_v22 = vrot.slane %v1514_v14, %v1473_v62  ;;  %v535_v23 = vrot.slane %v1514_v14, %v1398_v30  ;;  %v1543_v25 = vrot.slane %v645_v18, %v1398_v30 }
  0xa9   : > { %v1550_v27 = vrot.slane %v1412_v40, %v1398_v30  ;;  %v1554_v28 = vrot.slane %v1415_v42, %v1398_v30  ;;  %v885_v29 = vcombine.high %v1412_v40, %v1412_v40  ;;  %v886_v31 = vcombine.high %v1415_v42, %v1415_v42 }
  0xaa   : > { %v883_v32 = vrot.slane %v855_v1, %v1393_v24  ;;  %v483_v37 = vrot.slane %v1501_v8, %v1473_v62  ;;  %v457_v38 = vrot.slane %v1439_v51, %v1393_v24  ;;  %v612_v39 = vcombine.high %v1436_v50, %v1436_v50 }
  0xab   : > { %v1565_v33 = vrot.slane %v885_v29, %v1398_v30  ;;  %v1568_v34 = vrot.slane %v886_v31, %v1398_v30  ;;  %v276_v43 = vrot.slane %v1423_v46, %v1398_v30  ;;  %v280_v45 = vrot.slane %v1433_v49, %v1398_v30 }
  0xac   : > { %678 = vrot.lane.b32.xlu0 %v1494_v5, %s1297_s19  ;;  %363 = vrot.lane.b32.xlu1 %v272_v52, %s1295_s11  ;;  %v1571_v35 = vrot.slane %v883_v32, %v1398_v30  ;;  %v887_v36 = vcombine.high %v883_v32, %v883_v32  ;;  %v515_v41 = vrot.slane %v457_v38, %v1473_v62 }
  0xad   : > { %v634_v42 = vrot.slane %v612_v39, %v1393_v24  ;;  %v284_v24 = vrot.slane %v1431_v48, %v1398_v30  ;;  %v288_v46 = vrot.slane %v1455_v55, %v1398_v30  ;;  %v479_v47 = vrot.slane %v1501_v8, %v1398_v30 }
  0xae   : > { %v1580_v40 = vrot.slane %v887_v36, %v1398_v30  ;;  %v511_v48 = vrot.slane %v457_v38, %v1398_v30  ;;  %v642_v49 = vcombine.high %v1459_v57, %v1459_v57  ;;  %v491_v51 = vrot.slane %v1468_v60, %v1473_v62 }
  0xaf   : > { %v1593_v44 = vrot.slane %v634_v42, %v1398_v30  ;;  %v473_v54 = vcombine.high %v457_v38, %v457_v38  ;;  %v644_v56 = vcombine.high %v634_v42, %v634_v42 }
  0xb0   : > { %710 = vrot.lane.b32.xlu0 %v1494_v5, %s1298_s20  ;;  %395 = vrot.lane.b32.xlu1 %v272_v52, %s1296_s17  ;;  %v1631_v50 = vrot.slane %v642_v49, %v1398_v30  ;;  %v472_v52 = vcombine.high %v1501_v8, %v1501_v8 }
  0xb1   : > { %v531_v55 = vrot.slane %v473_v54, %v1473_v62  ;;  %v1661_v57 = vrot.slane %v644_v56, %v1398_v30 }
  0xb2   : > { %v499_v53 = vrot.slane %v472_v52, %v1473_v62  ;;  %v495_v58 = vrot.slane %v472_v52, %v1398_v30 }
  0xb4   : > { %742 = vrot.lane.b32.xlu0 %v1494_v5, %s1299_s24  ;;  %542 = vrot.lane.b32.xlu1 %v483_v37, %s1300_s25 }
  0xb8   : > { %774 = vrot.lane.b32.xlu0 %v1494_v5, %s1301_s26  ;;  %558 = vrot.lane.b32.xlu1 %v515_v41, %s1300_s25 }
  0xbc   : > { %301 = vrot.lane.b32.xlu0 %v276_v43, %s1294_s10  ;;  %680 = vrot.lane.b32.xlu1 %v1593_v44, %s1297_s19 }
  0xc0   : > { %712 = vrot.lane.b32.xlu1 %v1593_v44, %s1298_s20  ;;  %305 = vrot.lane.b32.xlu0 %v284_v24, %s1294_s10 }
  0xc4   : > { %744 = vrot.lane.b32.xlu1 %v1593_v44, %s1299_s24  ;;  %333 = vrot.lane.b32.xlu0 %v276_v43, %s1293_s9 }
  0xc8   : > { %776 = vrot.lane.b32.xlu1 %v1593_v44, %s1301_s26  ;;  %337 = vrot.lane.b32.xlu0 %v284_v24, %s1293_s9 }
  0xcc   : > { %303 = vrot.lane.b32.xlu1 %v280_v45, %s1294_s10  ;;  %365 = vrot.lane.b32.xlu0 %v276_v43, %s1295_s11 }
  0xd0   : > { %369 = vrot.lane.b32.xlu0 %v284_v24, %s1295_s11  ;;  %307 = vrot.lane.b32.xlu1 %v288_v46, %s1294_s10 }
  0xd4   : > { %397 = vrot.lane.b32.xlu0 %v276_v43, %s1296_s17  ;;  %335 = vrot.lane.b32.xlu1 %v280_v45, %s1293_s9 }
  0xd8   : > { %401 = vrot.lane.b32.xlu0 %v284_v24, %s1296_s17  ;;  %339 = vrot.lane.b32.xlu1 %v288_v46, %s1293_s9 }
  0xdc   : > { %540 = vrot.lane.b32.xlu0 %v479_v47, %s1300_s25  ;;  %367 = vrot.lane.b32.xlu1 %v280_v45, %s1295_s11 }
  0xe0   : > { %556 = vrot.lane.b32.xlu0 %v511_v48, %s1300_s25  ;;  %371 = vrot.lane.b32.xlu1 %v288_v46, %s1295_s11 }
  0xe4   : > { %682 = vrot.lane.b32.xlu0 %v1631_v50, %s1297_s19  ;;  %399 = vrot.lane.b32.xlu1 %v280_v45, %s1296_s17 }
  0xe8   : > { %686 = vrot.lane.b32.xlu0 %v1476_v63, %s1297_s19  ;;  %403 = vrot.lane.b32.xlu1 %v288_v46, %s1296_s17 }
  0xec   : > { %714 = vrot.lane.b32.xlu0 %v1631_v50, %s1298_s20  ;;  %546 = vrot.lane.b32.xlu1 %v491_v51, %s1300_s25 }
  0xf0   : > { %718 = vrot.lane.b32.xlu0 %v1476_v63, %s1298_s20  ;;  %550 = vrot.lane.b32.xlu1 %v499_v53, %s1300_s25 }
  0xf4   : > { %746 = vrot.lane.b32.xlu0 %v1631_v50, %s1299_s24  ;;  %562 = vrot.lane.b32.xlu1 %v523_v6, %s1300_s25 }
  0xf8   : > { %750 = vrot.lane.b32.xlu0 %v1476_v63, %s1299_s24  ;;  %566 = vrot.lane.b32.xlu1 %v531_v55, %s1300_s25 }
  0xfc   : > { %309 = vrot.lane.b32.xlu0 %v1486_v2, %s1294_s10  ;;  %684 = vrot.lane.b32.xlu1 %v1661_v57, %s1297_s19 }
 0x100   : > { %341 = vrot.lane.b32.xlu0 %v1486_v2, %s1293_s9  ;;  %688 = vrot.lane.b32.xlu1 %v1524_v16, %s1297_s19 }
 0x104   : > { %373 = vrot.lane.b32.xlu0 %v1486_v2, %s1295_s11  ;;  %716 = vrot.lane.b32.xlu1 %v1661_v57, %s1298_s20 }
 0x108   : > { %405 = vrot.lane.b32.xlu0 %v1486_v2, %s1296_s17  ;;  %720 = vrot.lane.b32.xlu1 %v1524_v16, %s1298_s20  ;;  %v527_v2 = vrot.slane %v473_v54, %v1398_v30 }
 0x10c   : > { %544 = vrot.lane.b32.xlu0 %v487_v7, %s1300_s25  ;;  %748 = vrot.lane.b32.xlu1 %v1661_v57, %s1299_s24 }
 0x110   : > { %548 = vrot.lane.b32.xlu0 %v495_v58, %s1300_s25  ;;  %752 = vrot.lane.b32.xlu1 %v1524_v16, %s1299_s24 }
 0x112   : > { %v330_v59 = vpop.permute.xlu0 %329  ;;  %v298_v61 = vpop.permute.xlu1 %297 }
 0x113   : > { %353 = vst.msk [vmem:[%s1418_s8 + $0x2] sm:$0x1] %vm256_vm0, %v330_v59  ;;  %321 = vst.msk [vmem:[%s1418_s8 + $0x1] sm:$0x1] %vm256_vm0, %v298_v61 }
 0x114   : > { %560 = vrot.lane.b32.xlu0 %v519_v10, %s1300_s25  ;;  %311 = vrot.lane.b32.xlu1 %v1527_v17, %s1294_s10 }
 0x116   : > { %v362_v60 = vpop.permute.xlu0 %361  ;;  %v300_v1 = vpop.permute.xlu1 %299 }
 0x117   : > { %385 = vst.msk [vmem:[%s1418_s8 + $0x3] sm:$0x1] %vm256_vm0, %v362_v60  ;;  %322 = vst.msk [vmem:[%s1418_s8 + $0x11] sm:$0x1] %vm256_vm0, %v300_v1 }
 0x118   : > { %564 = vrot.lane.b32.xlu0 %v527_v2, %s1300_s25  ;;  %343 = vrot.lane.b32.xlu1 %v1527_v17, %s1293_s9  ;;  %s1094_s9 = sshll.u32 %s1418_s8, 4  ;;  %s2090_s9 = int_to_ptr.vmem [resolvable:$true] %s1094_s9 }
 0x119   : > { %s1227_s16 = scalar_lea.vmem %s2090_s9, 2048 }
 0x11a   : > { %v394_v0 = vpop.permute.xlu0 %393  ;;  %v332_v3 = vpop.permute.xlu1 %331  ;;  %p1228_p11 = scmp.ne.s32.totalorder %s2090_s9, %s1227_s16 }
 0x11b   : > { %417 = vst.msk [vmem:[%s1418_s8 + $0x4] sm:$0x1] %vm256_vm0, %v394_v0  ;;  %354 = vst.msk [vmem:[%s1418_s8 + $0x12] sm:$0x1] %vm256_vm0, %v332_v3 }
 0x11c   : > { %690 = vrot.lane.b32.xlu0 %v1532_v19, %s1297_s19  ;;  %375 = vrot.lane.b32.xlu1 %v1527_v17, %s1295_s11  ;;  %p1229_p12 = pnand %p1228_p11, %p1368_p5 }
 0x11e   : > { %v679_v4 = vpop.permute.xlu0 %678  ;;  %v364_v6 = vpop.permute.xlu1 %363  ;;  %p1230_p13 = pneg %p1229_p12 }
 0x11f   : > { %702 = vst.msk [vmem:[%s1418_s8 + $0x6] sm:$0x1] %vm256_vm0, %v679_v4  ;;  %386 = vst.msk [vmem:[%s1418_s8 + $0x13] sm:$0x1] %vm256_vm0, %v364_v6 }
 0x120   : > { %722 = vrot.lane.b32.xlu0 %v1532_v19, %s1298_s20  ;;  %407 = vrot.lane.b32.xlu1 %v1527_v17, %s1296_s17  ;;  %s2088_s17 = scalar_lea.hbm %s2141_s3, %s1167_s7 }
 0x122   : > { %v711_v7 = vpop.permute.xlu0 %710  ;;  %v396_v8 = vpop.permute.xlu1 %395 }
 0x123   : > { %734 = vst.msk [vmem:[%s1418_s8 + $0x7] sm:$0x1] %vm256_vm0, %v711_v7  ;;  %418 = vst.msk [vmem:[%s1418_s8 + $0x14] sm:$0x1] %vm256_vm0, %v396_v8 }
 0x124   : > { %754 = vrot.lane.b32.xlu0 %v1532_v19, %s1299_s24  ;;  %554 = vrot.lane.b32.xlu1 %v507_v20, %s1300_s25 }
 0x126   : > { %v743_v9 = vpop.permute.xlu0 %742  ;;  %v1733_v10 = vpop.permute.xlu1 %542 }
 0x127   : > { %766 = vst.msk [vmem:[%s1418_s8 + $0x8] sm:$0x1] %vm256_vm0, %v743_v9 }
 0x128   : > { %552 = vrot.lane.b32.xlu0 %v503_v21, %s1300_s25  ;;  %570 = vrot.lane.b32.xlu1 %v539_v22, %s1300_s25 }
 0x12a   : > { %v775_v11 = vpop.permute.xlu0 %774  ;;  %v1745_v12 = vpop.permute.xlu1 %558 }
 0x12b   : > { %798 = vst.msk [vmem:[%s1418_s8 + $0x9] sm:$0x1] %vm256_vm0, %v775_v11 }
 0x12c   : > { %568 = vrot.lane.b32.xlu0 %v535_v23, %s1300_s25  ;;  %692 = vrot.lane.b32.xlu1 %v1543_v25, %s1297_s19  ;;  %s2096_s19 = scalar_lea.sflag [#allocation3], %s161_s6 }
 0x12e   : > { %v302_v13 = vpop.permute.xlu0 %301  ;;  %v681_v17 = vpop.permute.xlu1 %680 }
 0x12f   : > { %323 = vst.msk [vmem:[%s1418_s8 + $0x21] sm:$0x1] %vm256_vm0, %v302_v13  ;;  %703 = vst.msk [vmem:[%s1418_s8 + $0x16] sm:$0x1] %vm256_vm0, %v681_v17 }
 0x130   : > { %778 = vrot.lane.b32.xlu0 %v1631_v50, %s1301_s26  ;;  %724 = vrot.lane.b32.xlu1 %v1543_v25, %s1298_s20  ;;  %s1308_s20 = smov [#allocation2]  }
 0x132   : > { %v713_v30 = vpop.permute.xlu1 %712  ;;  %v306_v62 = vpop.permute.xlu0 %305 }
 0x133   : > { %735 = vst.msk [vmem:[%s1418_s8 + $0x17] sm:$0x1] %vm256_vm0, %v713_v30  ;;  %325 = vst.msk [vmem:[%s1418_s8 + $0x41] sm:$0x1] %vm256_vm0, %v306_v62 }
 0x134   : > { %782 = vrot.lane.b32.xlu0 %v1476_v63, %s1301_s26  ;;  %756 = vrot.lane.b32.xlu1 %v1543_v25, %s1299_s24  ;;  %s1231_s24 = sshll.u32 %s1308_s20, 4  ;;  %s1232_s24 = int_to_ptr.vmem [resolvable:$false] %s1231_s24 }
 0x135   : > { %p1234_p0 = scmp.lt.s32.totalorder %s2090_s9, %s1232_s24 }
 0x136   : > { %v745_v14 = vpop.permute.xlu1 %744  ;;  %v334_v18 = vpop.permute.xlu0 %333 }
 0x137   : > { %767 = vst.msk [vmem:[%s1418_s8 + $0x18] sm:$0x1] %vm256_vm0, %v745_v14  ;;  %355 = vst.msk [vmem:[%s1418_s8 + $0x22] sm:$0x1] %vm256_vm0, %v334_v18 }
 0x138   : > { %786 = vrot.lane.b32.xlu0 %v1532_v19, %s1301_s26  ;;  %780 = vrot.lane.b32.xlu1 %v1661_v57, %s1301_s26 }
 0x13a   : > { %v777_v20 = vpop.permute.xlu1 %776  ;;  %v338_v21 = vpop.permute.xlu0 %337 }
 0x13b   : > { %799 = vst.msk [vmem:[%s1418_s8 + $0x19] sm:$0x1] %vm256_vm0, %v777_v20  ;;  %357 = vst.msk [vmem:[%s1418_s8 + $0x42] sm:$0x1] %vm256_vm0, %v338_v21 }
 0x13c   : > { %806 = vrot.lane.b32.xlu0 %v1494_v5, %s1302_s27  ;;  %784 = vrot.lane.b32.xlu1 %v1524_v16, %s1301_s26 }
 0x13e   : > { %v304_v22 = vpop.permute.xlu1 %303  ;;  %v366_v23 = vpop.permute.xlu0 %365 }
 0x13f   : > { %324 = vst.msk [vmem:[%s1418_s8 + $0x31] sm:$0x1] %vm256_vm0, %v304_v22  ;;  %387 = vst.msk [vmem:[%s1418_s8 + $0x23] sm:$0x1] %vm256_vm0, %v366_v23 }
 0x140   : > { %810 = vrot.lane.b32.xlu0 %v1631_v50, %s1302_s27  ;;  %788 = vrot.lane.b32.xlu1 %v1543_v25, %s1301_s26  ;;  %s1233_s26 = scalar_lea.vmem %s1232_s24, 4096 }
 0x141   : > { %p1235_p1 = scmp.lt.s32.totalorder %s1233_s26, %s1227_s16 }
 0x142   : > { %v370_v5 = vpop.permute.xlu0 %369  ;;  %v308_v29 = vpop.permute.xlu1 %307 }
 0x143   : > { %389 = vst.msk [vmem:[%s1418_s8 + $0x43] sm:$0x1] %vm256_vm0, %v370_v5  ;;  %326 = vst.msk [vmem:[%s1418_s8 + $0x51] sm:$0x1] %vm256_vm0, %v308_v29  ;;  %p1236_p2 = por %p1235_p1, %p1234_p0 }
 0x144   : > { %814 = vrot.lane.b32.xlu0 %v1476_v63, %s1302_s27  ;;  %808 = vrot.lane.b32.xlu1 %v1593_v44, %s1302_s27 }
 0x145   : > { %p1237_p3 = pnand %p1236_p2, %p1230_p13 }
 0x146   : > { %v398_v31 = vpop.permute.xlu0 %397  ;;  %v336_v32 = vpop.permute.xlu1 %335 }
 0x147   : > { %419 = vst.msk [vmem:[%s1418_s8 + $0x24] sm:$0x1] %vm256_vm0, %v398_v31  ;;  %356 = vst.msk [vmem:[%s1418_s8 + $0x32] sm:$0x1] %vm256_vm0, %v336_v32 }
 0x148   : > { %818 = vrot.lane.b32.xlu0 %v1532_v19, %s1302_s27  ;;  %812 = vrot.lane.b32.xlu1 %v1661_v57, %s1302_s27 }
 0x14a   : > { %v402_v36 = vpop.permute.xlu0 %401  ;;  %v340_v37 = vpop.permute.xlu1 %339 }
 0x14b   : > { %421 = vst.msk [vmem:[%s1418_s8 + $0x44] sm:$0x1] %vm256_vm0, %v402_v36  ;;  %358 = vst.msk [vmem:[%s1418_s8 + $0x52] sm:$0x1] %vm256_vm0, %v340_v37 }
 0x14c   : > { %920 = vrot.lane.b32.xlu0 %v1518_v15, %s1303_s28  ;;  %816 = vrot.lane.b32.xlu1 %v1524_v16, %s1302_s27 }
 0x14e   : > { %v541_v63 = vpop.permute.xlu0 %540  ;;  %v368_v19 = vpop.permute.xlu1 %367 }
 0x14f   : > { %v573_v38 = vsel %vm572_vm1, %v541_v63, %v1733_v10  ;;  %388 = vst.msk [vmem:[%s1418_s8 + $0x33] sm:$0x1] %vm256_vm0, %v368_v19 }
 0x150   : > { %589 = vst.msk [vmem:[%s1418_s8 + $0x5] sm:$0x1] %vm256_vm0, %v573_v38  ;;  %924 = vrot.lane.b32.xlu0 %v1546_v26, %s1303_s28  ;;  %820 = vrot.lane.b32.xlu1 %v1543_v25, %s1302_s27 }
 0x152   : > { %v557_v16 = vpop.permute.xlu0 %556  ;;  %v372_v39 = vpop.permute.xlu1 %371 }
 0x153   : > { %v577_v41 = vsel %vm572_vm1, %v557_v16, %v1745_v12  ;;  %390 = vst.msk [vmem:[%s1418_s8 + $0x53] sm:$0x1] %vm256_vm0, %v372_v39 }
 0x154   : > { %593 = vst.msk [vmem:[%s1418_s8 + $0x45] sm:$0x1] %vm256_vm0, %v577_v41  ;;  %928 = vrot.lane.b32.xlu0 %v1550_v27, %s1303_s28  ;;  %922 = vrot.lane.b32.xlu1 %v1554_v28, %s1303_s28 }
 0x156   : > { %v683_v42 = vpop.permute.xlu0 %682  ;;  %v400_v25 = vpop.permute.xlu1 %399 }
 0x157   : > { %704 = vst.msk [vmem:[%s1418_s8 + $0x26] sm:$0x1] %vm256_vm0, %v683_v42  ;;  %420 = vst.msk [vmem:[%s1418_s8 + $0x34] sm:$0x1] %vm256_vm0, %v400_v25 }
 0x158   : > { %932 = vrot.lane.b32.xlu0 %v1565_v33, %s1303_s28  ;;  %926 = vrot.lane.b32.xlu1 %v1568_v34, %s1303_s28 }
 0x15a   : > { %v687_v43 = vpop.permute.xlu0 %686  ;;  %v404_v44 = vpop.permute.xlu1 %403 }
 0x15b   : > { %706 = vst.msk [vmem:[%s1418_s8 + $0x46] sm:$0x1] %vm256_vm0, %v687_v43  ;;  %422 = vst.msk [vmem:[%s1418_s8 + $0x54] sm:$0x1] %vm256_vm0, %v404_v44 }
 0x15c   : > { %952 = vrot.lane.b32.xlu0 %v1518_v15, %s1304_s29  ;;  %930 = vrot.lane.b32.xlu1 %v1571_v35, %s1303_s28 }
 0x15e   : > { %v715_v24 = vpop.permute.xlu0 %714  ;;  %v547_v45 = vpop.permute.xlu1 %546 }
 0x15f   : > { %736 = vst.msk [vmem:[%s1418_s8 + $0x27] sm:$0x1] %vm256_vm0, %v715_v24 }
 0x160   : > { %956 = vrot.lane.b32.xlu0 %v1546_v26, %s1304_s29  ;;  %934 = vrot.lane.b32.xlu1 %v1580_v40, %s1303_s28 }
 0x162   : > { %v719_v46 = vpop.permute.xlu0 %718  ;;  %v551_v47 = vpop.permute.xlu1 %550 }
 0x163   : > { %738 = vst.msk [vmem:[%s1418_s8 + $0x47] sm:$0x1] %vm256_vm0, %v719_v46 }
 0x164   : > { %960 = vrot.lane.b32.xlu0 %v1550_v27, %s1304_s29  ;;  %954 = vrot.lane.b32.xlu1 %v1554_v28, %s1304_s29 }
 0x166   : > { %v747_v48 = vpop.permute.xlu0 %746  ;;  %v563_v49 = vpop.permute.xlu1 %562 }
 0x167   : > { %768 = vst.msk [vmem:[%s1418_s8 + $0x28] sm:$0x1] %vm256_vm0, %v747_v48 }
 0x168   : > { %964 = vrot.lane.b32.xlu0 %v1565_v33, %s1304_s29  ;;  %958 = vrot.lane.b32.xlu1 %v1568_v34, %s1304_s29 }
 0x16a   : > { %v751_v50 = vpop.permute.xlu0 %750  ;;  %v567_v51 = vpop.permute.xlu1 %566 }
 0x16b   : > { %770 = vst.msk [vmem:[%s1418_s8 + $0x48] sm:$0x1] %vm256_vm0, %v751_v50 }
 0x16c   : > { %984 = vrot.lane.b32.xlu0 %v1518_v15, %s1305_s30  ;;  %962 = vrot.lane.b32.xlu1 %v1571_v35, %s1304_s29 }
 0x16e   : > { %v310_v52 = vpop.permute.xlu0 %309  ;;  %v685_v53 = vpop.permute.xlu1 %684 }
 0x16f   : > { %327 = vst.msk [vmem:[%s1418_s8 + $0x61] sm:$0x1] %vm256_vm0, %v310_v52  ;;  %705 = vst.msk [vmem:[%s1418_s8 + $0x36] sm:$0x1] %vm256_vm0, %v685_v53 }
 0x170   : > { %988 = vrot.lane.b32.xlu0 %v1546_v26, %s1305_s30  ;;  %966 = vrot.lane.b32.xlu1 %v1580_v40, %s1304_s29 }
 0x172   : > { %v342_v54 = vpop.permute.xlu0 %341  ;;  %v689_v55 = vpop.permute.xlu1 %688 }
 0x173   : > { %359 = vst.msk [vmem:[%s1418_s8 + $0x62] sm:$0x1] %vm256_vm0, %v342_v54  ;;  %707 = vst.msk [vmem:[%s1418_s8 + $0x56] sm:$0x1] %vm256_vm0, %v689_v55 }
 0x174   : > { %992 = vrot.lane.b32.xlu0 %v1550_v27, %s1305_s30  ;;  %986 = vrot.lane.b32.xlu1 %v1554_v28, %s1305_s30 }
 0x176   : > { %v374_v56 = vpop.permute.xlu0 %373  ;;  %v717_v57 = vpop.permute.xlu1 %716 }
 0x177   : > { %391 = vst.msk [vmem:[%s1418_s8 + $0x63] sm:$0x1] %vm256_vm0, %v374_v56  ;;  %737 = vst.msk [vmem:[%s1418_s8 + $0x37] sm:$0x1] %vm256_vm0, %v717_v57 }
 0x178   : > { %996 = vrot.lane.b32.xlu0 %v1565_v33, %s1305_s30  ;;  %990 = vrot.lane.b32.xlu1 %v1568_v34, %s1305_s30 }
 0x17a   : > { %v406_v58 = vpop.permute.xlu0 %405  ;;  %v721_v59 = vpop.permute.xlu1 %720 }
 0x17b   : > { %423 = vst.msk [vmem:[%s1418_s8 + $0x64] sm:$0x1] %vm256_vm0, %v406_v58  ;;  %739 = vst.msk [vmem:[%s1418_s8 + $0x57] sm:$0x1] %vm256_vm0, %v721_v59 }
 0x17c   : > { %1016 = vrot.lane.b32.xlu0 %v1518_v15, %s1306_s4  ;;  %994 = vrot.lane.b32.xlu1 %v1571_v35, %s1305_s30 }
 0x17e   : > { %v545_v61 = vpop.permute.xlu0 %544  ;;  %v749_v60 = vpop.permute.xlu1 %748 }
 0x17f   : > { %v574_v1 = vsel %vm572_vm1, %v545_v61, %v547_v45  ;;  %769 = vst.msk [vmem:[%s1418_s8 + $0x38] sm:$0x1] %vm256_vm0, %v749_v60 }
 0x180   : > { %590 = vst.msk [vmem:[%s1418_s8 + $0x15] sm:$0x1] %vm256_vm0, %v574_v1  ;;  %1020 = vrot.lane.b32.xlu0 %v1546_v26, %s1306_s4  ;;  %998 = vrot.lane.b32.xlu1 %v1580_v40, %s1305_s30 }
 0x182   : > { %v549_v2 = vpop.permute.xlu0 %548  ;;  %v753_v0 = vpop.permute.xlu1 %752 }
 0x183   : > { %v575_v3 = vsel %vm572_vm1, %v549_v2, %v551_v47  ;;  %771 = vst.msk [vmem:[%s1418_s8 + $0x58] sm:$0x1] %vm256_vm0, %v753_v0 }
 0x184   : > { %591 = vst.msk [vmem:[%s1418_s8 + $0x25] sm:$0x1] %vm256_vm0, %v575_v3  ;;  %1024 = vrot.lane.b32.xlu0 %v1550_v27, %s1306_s4  ;;  %1018 = vrot.lane.b32.xlu1 %v1554_v28, %s1306_s4 }
 0x186   : > { %v561_v4 = vpop.permute.xlu0 %560  ;;  %v312_v6 = vpop.permute.xlu1 %311 }
 0x187   : > { %v578_v7 = vsel %vm572_vm1, %v561_v4, %v563_v49  ;;  %328 = vst.msk [vmem:[%s1418_s8 + $0x71] sm:$0x1] %vm256_vm0, %v312_v6 }
 0x188   : > { %594 = vst.msk [vmem:[%s1418_s8 + $0x55] sm:$0x1] %vm256_vm0, %v578_v7  ;;  %1028 = vrot.lane.b32.xlu0 %v1565_v33, %s1306_s4  ;;  %1022 = vrot.lane.b32.xlu1 %v1568_v34, %s1306_s4 }
 0x18a   : > { %v565_v8 = vpop.permute.xlu0 %564  ;;  %v344_v9 = vpop.permute.xlu1 %343 }
 0x18b   : > { %v579_v10 = vsel %vm572_vm1, %v565_v8, %v567_v51  ;;  %360 = vst.msk [vmem:[%s1418_s8 + $0x72] sm:$0x1] %vm256_vm0, %v344_v9 }
 0x18c   : > { %595 = vst.msk [vmem:[%s1418_s8 + $0x65] sm:$0x1] %vm256_vm0, %v579_v10  ;;  %1048 = vrot.lane.b32.xlu0 %v1518_v15, %s1307_s5  ;;  %1026 = vrot.lane.b32.xlu1 %v1571_v35, %s1306_s4 }
 0x18e   : > { %v691_v11 = vpop.permute.xlu0 %690  ;;  %v376_v12 = vpop.permute.xlu1 %375 }
 0x18f   : > { %708 = vst.msk [vmem:[%s1418_s8 + $0x66] sm:$0x1] %vm256_vm0, %v691_v11  ;;  %392 = vst.msk [vmem:[%s1418_s8 + $0x73] sm:$0x1] %vm256_vm0, %v376_v12 }
 0x190   : > { %1052 = vrot.lane.b32.xlu0 %v1546_v26, %s1307_s5  ;;  %1030 = vrot.lane.b32.xlu1 %v1580_v40, %s1306_s4 }
 0x192   : > { %v723_v13 = vpop.permute.xlu0 %722  ;;  %v408_v17 = vpop.permute.xlu1 %407 }
 0x193   : > { %740 = vst.msk [vmem:[%s1418_s8 + $0x67] sm:$0x1] %vm256_vm0, %v723_v13  ;;  %424 = vst.msk [vmem:[%s1418_s8 + $0x74] sm:$0x1] %vm256_vm0, %v408_v17 }
 0x194   : > { %1056 = vrot.lane.b32.xlu0 %v1550_v27, %s1307_s5  ;;  %1050 = vrot.lane.b32.xlu1 %v1554_v28, %s1307_s5 }
 0x196   : > { %v755_v15 = vpop.permute.xlu0 %754  ;;  %v555_v26 = vpop.permute.xlu1 %554 }
 0x197   : > { %772 = vst.msk [vmem:[%s1418_s8 + $0x68] sm:$0x1] %vm256_vm0, %v755_v15 }
 0x198   : > { %1060 = vrot.lane.b32.xlu0 %v1565_v33, %s1307_s5  ;;  %1054 = vrot.lane.b32.xlu1 %v1568_v34, %s1307_s5 }
 0x19a   : > { %v553_v30 = vpop.permute.xlu0 %552  ;;  %v571_v62 = vpop.permute.xlu1 %570 }
 0x19b   : > { %v576_v27 = vsel %vm572_vm1, %v553_v30, %v555_v26 }
 0x19c   : > { %592 = vst.msk [vmem:[%s1418_s8 + $0x35] sm:$0x1] %vm256_vm0, %v576_v27  ;;  %1058 = vrot.lane.b32.xlu1 %v1571_v35, %s1307_s5 }
 0x19e   : > { %v569_v28 = vpop.permute.xlu0 %568  ;;  %v693_v14 = vpop.permute.xlu1 %692 }
 0x19f   : > { %v580_v33 = vsel %vm572_vm1, %v569_v28, %v571_v62  ;;  %709 = vst.msk [vmem:[%s1418_s8 + $0x76] sm:$0x1] %vm256_vm0, %v693_v14 }
 0x1a0   : > { %596 = vst.msk [vmem:[%s1418_s8 + $0x75] sm:$0x1] %vm256_vm0, %v580_v33  ;;  %1062 = vrot.lane.b32.xlu1 %v1580_v40, %s1307_s5 }
 0x1a2   : > { %v779_v34 = vpop.permute.xlu0 %778  ;;  %v725_v18 = vpop.permute.xlu1 %724 }
 0x1a3   : > { %800 = vst.msk [vmem:[%s1418_s8 + $0x29] sm:$0x1] %vm256_vm0, %v779_v34  ;;  %741 = vst.msk [vmem:[%s1418_s8 + $0x77] sm:$0x1] %vm256_vm0, %v725_v18 }
 0x1a6   : > { %v783_v35 = vpop.permute.xlu0 %782  ;;  %v757_v20 = vpop.permute.xlu1 %756 }
 0x1a7   : > { %802 = vst.msk [vmem:[%s1418_s8 + $0x49] sm:$0x1] %vm256_vm0, %v783_v35  ;;  %773 = vst.msk [vmem:[%s1418_s8 + $0x78] sm:$0x1] %vm256_vm0, %v757_v20 }
 0x1aa   : > { %v787_v21 = vpop.permute.xlu0 %786  ;;  %v781_v22 = vpop.permute.xlu1 %780 }
 0x1ab   : > { %804 = vst.msk [vmem:[%s1418_s8 + $0x69] sm:$0x1] %vm256_vm0, %v787_v21  ;;  %801 = vst.msk [vmem:[%s1418_s8 + $0x39] sm:$0x1] %vm256_vm0, %v781_v22 }
 0x1ae   : > { %v807_v40 = vpop.permute.xlu0 %806  ;;  %v785_v23 = vpop.permute.xlu1 %784 }
 0x1af   : > { %830 = vst.msk [vmem:[%s1418_s8 + $0xa] sm:$0x1] %vm256_vm0, %v807_v40  ;;  %803 = vst.msk [vmem:[%s1418_s8 + $0x59] sm:$0x1] %vm256_vm0, %v785_v23 }
 0x1b2   : > { %v811_v5 = vpop.permute.xlu0 %810  ;;  %v789_v29 = vpop.permute.xlu1 %788 }
 0x1b3   : > { %832 = vst.msk [vmem:[%s1418_s8 + $0x2a] sm:$0x1] %vm256_vm0, %v811_v5  ;;  %805 = vst.msk [vmem:[%s1418_s8 + $0x79] sm:$0x1] %vm256_vm0, %v789_v29 }
 0x1b6   : > { %v815_v31 = vpop.permute.xlu0 %814  ;;  %v809_v32 = vpop.permute.xlu1 %808 }
 0x1b7   : > { %834 = vst.msk [vmem:[%s1418_s8 + $0x4a] sm:$0x1] %vm256_vm0, %v815_v31  ;;  %831 = vst.msk [vmem:[%s1418_s8 + $0x1a] sm:$0x1] %vm256_vm0, %v809_v32 }
 0x1ba   : > { %v819_v36 = vpop.permute.xlu0 %818  ;;  %v813_v37 = vpop.permute.xlu1 %812 }
 0x1bb   : > { %836 = vst.msk [vmem:[%s1418_s8 + $0x6a] sm:$0x1] %vm256_vm0, %v819_v36  ;;  %833 = vst.msk [vmem:[%s1418_s8 + $0x3a] sm:$0x1] %vm256_vm0, %v813_v37 }
 0x1be   : > { %v921_v63 = vpop.permute.xlu0 %920  ;;  %v817_v19 = vpop.permute.xlu1 %816 }
 0x1bf   : > { %944 = vst.msk [vmem:[%s1418_s8 + $0xb] sm:$0x1] %vm256_vm0, %v921_v63  ;;  %835 = vst.msk [vmem:[%s1418_s8 + $0x5a] sm:$0x1] %vm256_vm0, %v817_v19 }
 0x1c2   : > { %v925_v38 = vpop.permute.xlu0 %924  ;;  %v821_v16 = vpop.permute.xlu1 %820 }
 0x1c3   : > { %946 = vst.msk [vmem:[%s1418_s8 + $0x2b] sm:$0x1] %vm256_vm0, %v925_v38  ;;  %837 = vst.msk [vmem:[%s1418_s8 + $0x7a] sm:$0x1] %vm256_vm0, %v821_v16 }
 0x1c6   : > { %v929_v39 = vpop.permute.xlu0 %928  ;;  %v923_v41 = vpop.permute.xlu1 %922 }
 0x1c7   : > { %948 = vst.msk [vmem:[%s1418_s8 + $0x4b] sm:$0x1] %vm256_vm0, %v929_v39  ;;  %945 = vst.msk [vmem:[%s1418_s8 + $0x1b] sm:$0x1] %vm256_vm0, %v923_v41 }
 0x1ca   : > { %v933_v42 = vpop.permute.xlu0 %932  ;;  %v927_v25 = vpop.permute.xlu1 %926 }
 0x1cb   : > { %950 = vst.msk [vmem:[%s1418_s8 + $0x6b] sm:$0x1] %vm256_vm0, %v933_v42  ;;  %947 = vst.msk [vmem:[%s1418_s8 + $0x3b] sm:$0x1] %vm256_vm0, %v927_v25 }
 0x1ce   : > { %v953_v43 = vpop.permute.xlu0 %952  ;;  %v931_v44 = vpop.permute.xlu1 %930 }
 0x1cf   : > { %976 = vst.msk [vmem:[%s1418_s8 + $0xc] sm:$0x1] %vm256_vm0, %v953_v43  ;;  %949 = vst.msk [vmem:[%s1418_s8 + $0x5b] sm:$0x1] %vm256_vm0, %v931_v44 }
 0x1d2   : > { %v957_v24 = vpop.permute.xlu0 %956  ;;  %v935_v45 = vpop.permute.xlu1 %934 }
 0x1d3   : > { %978 = vst.msk [vmem:[%s1418_s8 + $0x2c] sm:$0x1] %vm256_vm0, %v957_v24  ;;  %951 = vst.msk [vmem:[%s1418_s8 + $0x7b] sm:$0x1] %vm256_vm0, %v935_v45 }
 0x1d6   : > { %v961_v46 = vpop.permute.xlu0 %960  ;;  %v955_v47 = vpop.permute.xlu1 %954 }
 0x1d7   : > { %980 = vst.msk [vmem:[%s1418_s8 + $0x4c] sm:$0x1] %vm256_vm0, %v961_v46  ;;  %977 = vst.msk [vmem:[%s1418_s8 + $0x1c] sm:$0x1] %vm256_vm0, %v955_v47 }
 0x1da   : > { %v965_v48 = vpop.permute.xlu0 %964  ;;  %v959_v49 = vpop.permute.xlu1 %958 }
 0x1db   : > { %982 = vst.msk [vmem:[%s1418_s8 + $0x6c] sm:$0x1] %vm256_vm0, %v965_v48  ;;  %979 = vst.msk [vmem:[%s1418_s8 + $0x3c] sm:$0x1] %vm256_vm0, %v959_v49 }
 0x1de   : > { %v985_v50 = vpop.permute.xlu0 %984  ;;  %v963_v51 = vpop.permute.xlu1 %962 }
 0x1df   : > { %1008 = vst.msk [vmem:[%s1418_s8 + $0xd] sm:$0x1] %vm256_vm0, %v985_v50  ;;  %981 = vst.msk [vmem:[%s1418_s8 + $0x5c] sm:$0x1] %vm256_vm0, %v963_v51 }
 0x1e2   : > { %v989_v52 = vpop.permute.xlu0 %988  ;;  %v967_v53 = vpop.permute.xlu1 %966 }
 0x1e3   : > { %1010 = vst.msk [vmem:[%s1418_s8 + $0x2d] sm:$0x1] %vm256_vm0, %v989_v52  ;;  %983 = vst.msk [vmem:[%s1418_s8 + $0x7c] sm:$0x1] %vm256_vm0, %v967_v53 }
 0x1e6   : > { %v993_v54 = vpop.permute.xlu0 %992  ;;  %v987_v55 = vpop.permute.xlu1 %986 }
 0x1e7   : > { %1012 = vst.msk [vmem:[%s1418_s8 + $0x4d] sm:$0x1] %vm256_vm0, %v993_v54  ;;  %1009 = vst.msk [vmem:[%s1418_s8 + $0x1d] sm:$0x1] %vm256_vm0, %v987_v55 }
 0x1ea   : > { %v997_v56 = vpop.permute.xlu0 %996  ;;  %v991_v57 = vpop.permute.xlu1 %990 }
 0x1eb   : > { %1014 = vst.msk [vmem:[%s1418_s8 + $0x6d] sm:$0x1] %vm256_vm0, %v997_v56  ;;  %1011 = vst.msk [vmem:[%s1418_s8 + $0x3d] sm:$0x1] %vm256_vm0, %v991_v57 }
 0x1ee   : > { %v1017_v58 = vpop.permute.xlu0 %1016  ;;  %v995_v59 = vpop.permute.xlu1 %994 }
 0x1ef   : > { %1040 = vst.msk [vmem:[%s1418_s8 + $0xe] sm:$0x1] %vm256_vm0, %v1017_v58  ;;  %1013 = vst.msk [vmem:[%s1418_s8 + $0x5d] sm:$0x1] %vm256_vm0, %v995_v59 }
 0x1f2   : > { %v1021_v61 = vpop.permute.xlu0 %1020  ;;  %v999_v60 = vpop.permute.xlu1 %998 }
 0x1f3   : > { %1042 = vst.msk [vmem:[%s1418_s8 + $0x2e] sm:$0x1] %vm256_vm0, %v1021_v61  ;;  %1015 = vst.msk [vmem:[%s1418_s8 + $0x7d] sm:$0x1] %vm256_vm0, %v999_v60 }
 0x1f6   : > { %v1025_v1 = vpop.permute.xlu0 %1024  ;;  %v1019_v2 = vpop.permute.xlu1 %1018 }
 0x1f7   : > { %1044 = vst.msk [vmem:[%s1418_s8 + $0x4e] sm:$0x1] %vm256_vm0, %v1025_v1  ;;  %1041 = vst.msk [vmem:[%s1418_s8 + $0x1e] sm:$0x1] %vm256_vm0, %v1019_v2 }
 0x1fa   : > { %v1029_v0 = vpop.permute.xlu0 %1028  ;;  %v1023_v3 = vpop.permute.xlu1 %1022 }
 0x1fb   : > { %1046 = vst.msk [vmem:[%s1418_s8 + $0x6e] sm:$0x1] %vm256_vm0, %v1029_v0  ;;  %1043 = vst.msk [vmem:[%s1418_s8 + $0x3e] sm:$0x1] %vm256_vm0, %v1023_v3 }
 0x1fe   : > { %v1049_v4 = vpop.permute.xlu0 %1048  ;;  %v1027_v6 = vpop.permute.xlu1 %1026 }
 0x1ff   : > { %1072 = vst.msk [vmem:[%s1418_s8 + $0xf] sm:$0x1] %vm256_vm0, %v1049_v4  ;;  %1045 = vst.msk [vmem:[%s1418_s8 + $0x5e] sm:$0x1] %vm256_vm0, %v1027_v6 }
 0x202   : > { %v1053_v7 = vpop.permute.xlu0 %1052  ;;  %v1031_v8 = vpop.permute.xlu1 %1030 }
 0x203   : > { %1074 = vst.msk [vmem:[%s1418_s8 + $0x2f] sm:$0x1] %vm256_vm0, %v1053_v7  ;;  %1047 = vst.msk [vmem:[%s1418_s8 + $0x7e] sm:$0x1] %vm256_vm0, %v1031_v8 }
 0x206   : > { %v1057_v9 = vpop.permute.xlu0 %1056  ;;  %v1051_v10 = vpop.permute.xlu1 %1050 }
 0x207   : > { %1076 = vst.msk [vmem:[%s1418_s8 + $0x4f] sm:$0x1] %vm256_vm0, %v1057_v9  ;;  %1073 = vst.msk [vmem:[%s1418_s8 + $0x1f] sm:$0x1] %vm256_vm0, %v1051_v10 }
 0x20a   : > { %v1061_v11 = vpop.permute.xlu0 %1060  ;;  %v1055_v12 = vpop.permute.xlu1 %1054 }
 0x20b   : > { %1078 = vst.msk [vmem:[%s1418_s8 + $0x6f] sm:$0x1] %vm256_vm0, %v1061_v11  ;;  %1075 = vst.msk [vmem:[%s1418_s8 + $0x3f] sm:$0x1] %vm256_vm0, %v1055_v12 }
 0x20e   : > { %v1059_v13 = vpop.permute.xlu1 %1058 }
 0x20f   : > { %1077 = vst.msk [vmem:[%s1418_s8 + $0x5f] sm:$0x1] %vm256_vm0, %v1059_v13 }
 0x212   : > { %v1063_v17 = vpop.permute.xlu1 %1062 }
 0x213   : > { %1079 = vst.msk [vmem:[%s1418_s8 + $0x7f] sm:$0x1] %vm256_vm0, %v1063_v17 }
 0x214   : > { %1240 = shalt.err (!%p1237_p3)
}
 0x215   : > { %s1241_s6 = scalar_lea.hbm %s2088_s17, 2048  ;;  %s1245_s28 = scalar_lea.hbm %s2141_s3, 4096 }
 0x216   : > { %p1242_p4 = scmp.ne.s32.totalorder %s2088_s17, %s1241_s6  ;;  %p1246_p9 = scmp.lt.u32.totalorder %s2088_s17, %s2141_s3 }
 0x217   : > { %p1247_p10 = scmp.lt.u32.totalorder %s1245_s28, %s1241_s6  ;;  %p1249_p12 = scmp.lt.u32.totalorder %s1241_s6, %s2088_s17 }
 0x218   : > { %p1243_p7 = pnand %p1242_p4, %p1368_p5 }
 0x219   : > { %p1248_p11 = por %p1247_p10, %p1246_p9 }
 0x21a   : > { %p1244_p8 = pneg %p1243_p7 }
 0x21b   : > { %p1250_p13 = por %p1249_p12, %p1248_p11 }
 0x21d   : > { %p1251_p0 = pnand %p1250_p13, %p1244_p8 }
 0x21f   : > { %1254 = shalt.err (!%p1251_p0)
}
 0x220   : > { %s1309_s4 = smov 128  }
 0x221   : > { %1169 = dma.vmem_to_hbm [thread:$0]  (%p1368_p5), %s2090_s9, 2048, %s2088_s17, %s2096_s19, %s1309_s4, %s1309_s4, %s1300_s25  }
 0x222 PF: > { %p1175_p1 = scmp.ge.s32.totalorder %s1289_s15, 2  ;;  %s1109_s5 = sand.u32 1, %s1277_s12  }
 0x223   : > { %s1110_s7 = scalar_lea.sflag [#allocation3], %s1109_s5 }
 0x224   : > { %p1172_p2 = pnand %p1175_p1, %p1372_p6 }
 0x226   : > { %1272 = dma.done.wait (!%p1172_p2), %s1110_s7, 2048  }
 0x227   : > { %1274 = vsyncadd (!%p1172_p2), %s1110_s7, 4294965248  ;;  %p13_p3 = scmp.ge.s32.totalorder %s1355_s18, 4   ;;  %s2144_s12 = smov %s1281_s13 }
 0x228   : > { %s2145_s13 = smov %s1285_s14  ;;  %s2146_s14 = smov %s1366_s21 }
 0x229   : > { %s2147_s15 = smov %s1355_s18  ;;  %15 = sbr.rel (!%p13_p3) target bundleno = 3 (0x3), region = 67 }
 0x230   :  { %1115 = vsyncpa [#allocation3], 1 }
 0x231   :  { %1117 = vsyncpa [#allocation3 + $0x1], 1 }

</bundles_post_ra>
